<compile_context>
chip_gen: v7x
topology: tpu7x:2x2x1
jax: 0.10.0
libtpu: 0.0.40
codegen_flags: <defaults>
</compile_context>

<pallas_src>
import jax
import jax.numpy as jnp
import numpy as np
from jax.experimental import pallas as pl
from jax.experimental.pallas import tpu as pltpu

NPOSE = 24 * 6                    # 144
NSHAPE = 10
NCAM = 3
NSTATE = NPOSE + NSHAPE + NCAM    # 157
STATE_PAD = 256                   # lane-aligned state slab (2 x 128 lanes)
FEAT = 512 * 4                    # 2048 (ResNet50 pooled features)
HIDDEN = 1024
N_ITER = 3
TILE_B = 512                      # max batch-tile (sublane / MXU M dimension)

_HIGHEST = jax.lax.Precision.HIGHEST


def _mm(a, b):
    """Full-precision f32 matmul (used only for host-side weight composition
    and the pure-JAX reference)."""
    return jnp.dot(a, b, precision=_HIGHEST)


# ---------------------------------------------------------------------------
# Pallas kernel
# ---------------------------------------------------------------------------
def regressor_kernel(xf_ref, state0_ref, a_xf_ref, a_s_ref, b_fold_ref, out_ref):
    # Loop-invariant xf projection with ALL biases folded in.  The [1,256]
    # b_fold broadcast happens exactly once, outside the unrolled loop.
    xf_proj = (jnp.dot(xf_ref[...], a_xf_ref[...],
                       preferred_element_type=jnp.float32)
               + b_fold_ref[...])                                # f32 [tb, 256]
    state = state0_ref[...]                                      # f32 [tb, 256]

    for _ in range(N_ITER):   # n_iter = 3 is static -> unrolled
        # drop1 / drop2: identity (eval mode).
        # TODO(synk): training-mode dropout (p=0.5) would require the
        # uncollapsed 3-matmul chain; this affine-collapsed path is eval-only.
        state = state + xf_proj + jnp.dot(state.astype(jnp.bfloat16),
                                          a_s_ref[...],
                                          preferred_element_type=jnp.float32)

    out_ref[...] = state                                         # lane-dense f32


# ---------------------------------------------------------------------------
# Wrapper
# ---------------------------------------------------------------------------
def _round_up(x, m):
    return (x + m - 1) // m * m


def _cdiv(a, b):
    return -(-a // b)


def _batch_tiling(batch):
    """Rows padded to a multiple of 16 (bf16 packs two rows per sublane),
    tiles capped at TILE_B, and >= 2 even grid steps for mid/large batches so
    both v7x TensorCores get work."""
    bp0 = _round_up(batch, 16)
    if bp0 <= 256:
        return bp0, 1
    n_tiles = max(2, _cdiv(bp0, TILE_B))
    tile_b = _round_up(_cdiv(bp0, n_tiles), 16)
    return tile_b, n_tiles


@jax.jit
def regressor_state(xf, init_pose, init_shape, init_cam, kparams):
    """Runs the Pallas kernel; returns the raw (pose6d, shape, cam) state."""
    B = xf.shape[0]
    tile_b, n_tiles = _batch_tiling(B)
    Bp = tile_b * n_tiles

    # bf16 xf: halves the dominant per-tile input DMA (MXU consumes bf16).
    xf_p = jnp.pad(xf.astype(jnp.bfloat16), ((0, Bp - B), (0, 0)))

    # Packed lane-aligned state slab [pose | shape | cam | 0-pad]; one concat +
    # one pad (per-sample inits supported, matching the PyTorch API).
    state0 = jnp.concatenate([init_pose, init_shape, init_cam],
                             axis=1).astype(jnp.float32)
    state0 = jnp.pad(state0, ((0, Bp - B), (0, STATE_PAD - NSTATE)))

    # Advisory cost estimate so XLA schedules around the custom call.
    flops = 2 * Bp * (FEAT * STATE_PAD + N_ITER * STATE_PAD * STATE_PAD)
    bytes_accessed = (2 * (FEAT + STATE_PAD) * STATE_PAD      # bf16 weights
                      + 4 * STATE_PAD                          # b_fold
                      + 2 * Bp * FEAT                          # bf16 xf
                      + 4 * Bp * STATE_PAD * 2)                # state in + out

    state_out = pl.pallas_call(
        regressor_kernel,
        out_shape=jax.ShapeDtypeStruct((Bp, STATE_PAD), jnp.float32),
        grid=(n_tiles,),
        in_specs=[
            pl.BlockSpec((tile_b, FEAT), lambda i: (i, 0)),          # xf (bf16)
            pl.BlockSpec((tile_b, STATE_PAD), lambda i: (i, 0)),     # state0 (f32)
            # Composed weights: constant index_map -> VMEM-resident across the
            # batch grid (no re-DMA between consecutive grid steps).
            pl.BlockSpec((FEAT, STATE_PAD), lambda i: (0, 0)),       # A_xf (bf16)
            pl.BlockSpec((STATE_PAD, STATE_PAD), lambda i: (0, 0)),  # A_s  (bf16)
            pl.BlockSpec((1, STATE_PAD), lambda i: (0, 0)),          # b_fold (f32)
        ],
        out_specs=pl.BlockSpec((tile_b, STATE_PAD), lambda i: (i, 0)),
        compiler_params=pltpu.CompilerParams(
            dimension_semantics=("parallel",),
            vmem_limit_bytes=32 * 1024 * 1024),   # safe on v5e/v6e/v7x
        cost_estimate=pl.CostEstimate(flops=flops, transcendentals=0,
                                      bytes_accessed=bytes_accessed),
    )(xf_p, state0, kparams["a_xf"], kparams["a_s"], kparams["b_fold"])

    pred_pose = state_out[:B, :NPOSE]
    pred_shape = state_out[:B, NPOSE:NPOSE + NSHAPE]
    pred_cam = state_out[:B, NPOSE + NSHAPE:NSTATE]
    return pred_pose, pred_shape, pred_cam


@jax.jit
def regressor_forward(xf, init_pose, init_shape, init_cam, kparams):
    """Matches the PyTorch module's return: (rotmat[B,24,3,3], shape, cam)."""
    pred_pose, pred_shape, pred_cam = regressor_state(
        xf, init_pose, init_shape, init_cam, kparams)
    B = pred_pose.shape[0]
    pred_rotmat = rot6d_to_rotmat(pred_pose).reshape(B, 24, 3, 3)
    return pred_rotmat, pred_shape, pred_cam


def rot6d_to_rotmat(x):
    """Standard SPIN/HMR 6D-rotation -> rotation-matrix conversion (plain JAX)."""
    eps = 1e-12
    x = x.reshape(-1, 3, 2)
    a1 = x[:, :, 0]
    a2 = x[:, :, 1]
    b1 = a1 / jnp.maximum(jnp.linalg.norm(a1, axis=1, keepdims=True), eps)
    dot = jnp.sum(b1 * a2, axis=1, keepdims=True)
    u2 = a2 - dot * b1
    b2 = u2 / jnp.maximum(jnp.linalg.norm(u2, axis=1, keepdims=True), eps)
    b3 = jnp.cross(b1, b2)
    return jnp.stack((b1, b2, b3), axis=-1)  # columns are b1, b2, b3


# ---------------------------------------------------------------------------
# Parameters: raw (PyTorch-shaped) weights + one-time affine precomposition
# ---------------------------------------------------------------------------
def init_params(key):
    """Deterministic synthetic parameters matching the PyTorch module shapes
    (stored [in_features, out_features]); buffers stand in for the
    smpl_mean_params npz."""
    ks = jax.random.split(key, 12)
    in1 = FEAT + NSTATE  # 2205

    def xavier(k, fan_in, fan_out, gain=1.0):
        bound = gain * (6.0 / (fan_in + fan_out)) ** 0.5
        return jax.random.uniform(k, (fan_in, fan_out), jnp.float32, -bound, bound)

    return {
        "w1": xavier(ks[0], in1, HIDDEN),
        "b1": jax.random.uniform(ks[1], (HIDDEN,), jnp.float32, -0.01, 0.01),
        "w2": xavier(ks[2], HIDDEN, HIDDEN),
        "b2": jax.random.uniform(ks[3], (HIDDEN,), jnp.float32, -0.01, 0.01),
        # dec heads: xavier_uniform with gain=0.01 (as in the PyTorch __init__)
        "w_pose": xavier(ks[4], HIDDEN, NPOSE, gain=0.01),
        "b_pose": jax.random.uniform(ks[5], (NPOSE,), jnp.float32, -0.01, 0.01),
        "w_shape": xavier(ks[6], HIDDEN, NSHAPE, gain=0.01),
        "b_shape": jax.random.uniform(ks[7], (NSHAPE,), jnp.float32, -0.01, 0.01),
        "w_cam": xavier(ks[8], HIDDEN, NCAM, gain=0.01),
        "b_cam": jax.random.uniform(ks[9], (NCAM,), jnp.float32, -0.01, 0.01),
        "init_pose":  0.1 * jax.random.normal(ks[10], (1, NPOSE), jnp.float32),
        "init_shape": 0.1 * jax.random.normal(ks[11], (1, NSHAPE), jnp.float32),
        "init_cam":   jnp.array([[0.9, 0.0, 0.0]], jnp.float32),
    }


def precompose_params(raw):
    """Fold the eval-mode affine chain (compose in f32, store bf16).  Exact in
    eval mode only; must be bypassed if training-mode dropout is implemented."""
    w_dec = jnp.concatenate([raw["w_pose"], raw["w_shape"], raw["w_cam"]], axis=1)
    w_dec = jnp.pad(w_dec, ((0, 0), (0, STATE_PAD - NSTATE)))        # [1024, 256]
    b_dec = jnp.concatenate([raw["b_pose"], raw["b_shape"], raw["b_cam"]])
    b_dec = jnp.pad(b_dec, (0, STATE_PAD - NSTATE))                  # [256]

    a = _mm(raw["w2"], w_dec)                                        # [1024, 256]
    a_xf = _mm(raw["w1"][:FEAT], a)                                  # [2048, 256]
    a_s = jnp.pad(_mm(raw["w1"][FEAT:], a),
                  ((0, STATE_PAD - NSTATE), (0, 0)))                 # [256, 256]
    b_fold = _mm(raw["b1"][None, :], a)[0] + _mm(raw["b2"][None, :], w_dec)[0] + b_dec

    return {
        "a_xf": a_xf.astype(jnp.bfloat16),
        "a_s": a_s.astype(jnp.bfloat16),
        "b_fold": b_fold[None, :].astype(jnp.float32),               # [1, 256]
    }


def regressor_reference(xf, init_pose, init_shape, init_cam, raw, n_iter=N_ITER):
    """Pure-JAX f32 reference of the original (uncollapsed) forward pass."""
    pose, shape, cam = init_pose, init_shape, init_cam
    for _ in range(n_iter):
        xc = jnp.concatenate([xf, pose, shape, cam], axis=1)
        xc = _mm(xc, raw["w1"]) + raw["b1"]
        xc = _mm(xc, raw["w2"]) + raw["b2"]
        pose = _mm(xc, raw["w_pose"]) + raw["b_pose"] + pose
        shape = _mm(xc, raw["w_shape"]) + raw["b_shape"] + shape
        cam = _mm(xc, raw["w_cam"]) + raw["b_cam"] + cam
    return pose, shape, cam


# ---------------------------------------------------------------------------
if __name__ == "__main__":
    B = 2
    key = jax.random.PRNGKey(0)
    k_par, k_x = jax.random.split(key)
    raw = init_params(k_par)
    kparams = precompose_params(raw)

    xf = jax.random.normal(k_x, (B, FEAT), jnp.float32)   # ResNet50 pooled feats
    init_pose = jnp.broadcast_to(raw["init_pose"], (B, NPOSE))
    init_shape = jnp.broadcast_to(raw["init_shape"], (B, NSHAPE))
    init_cam = jnp.broadcast_to(raw["init_cam"], (B, NCAM))

    pred_rotmat, pred_shape, pred_cam = regressor_forward(
        xf, init_pose, init_shape, init_cam, kparams)
    jax.block_until_ready((pred_rotmat, pred_shape, pred_cam))

    assert pred_rotmat.shape == (B, 24, 3, 3)
    assert pred_shape.shape == (B, NSHAPE)
    assert pred_cam.shape == (B, NCAM)

    # Numerics guard: bf16 / affine-collapsed Pallas path vs pure-f32 reference.
    pose_k, shape_k, cam_k = regressor_state(xf, init_pose, init_shape,
                                             init_cam, kparams)
    pose_r, shape_r, cam_r = regressor_reference(xf, init_pose, init_shape,
                                                 init_cam, raw)
    np.testing.assert_allclose(np.asarray(pose_k), np.asarray(pose_r),
                               rtol=2e-2, atol=2e-2)
    np.testing.assert_allclose(np.asarray(shape_k), np.asarray(shape_r),
                               rtol=2e-2, atol=2e-2)
    np.testing.assert_allclose(np.asarray(cam_k), np.asarray(cam_r),
                               rtol=2e-2, atol=2e-2)

    print("KERNEL_OK")
</pallas_src>

<mosaic_0001>
module attributes {stable_mosaic.version = 11 : i64} {
  func.func @regressor_kernel(%arg0: i32, %arg1: memref<16x2048xbf16, #tpu.memory_space<vmem>>, %arg2: memref<16x256xf32, #tpu.memory_space<vmem>>, %arg3: memref<2048x256xbf16, #tpu.memory_space<vmem>>, %arg4: memref<256x256xbf16, #tpu.memory_space<vmem>>, %arg5: memref<1x256xf32, #tpu.memory_space<vmem>>, %arg6: memref<16x256xf32, #tpu.memory_space<vmem>>) attributes {dimension_semantics = [#tpu.dimension_semantics<parallel>], iteration_bounds = array<i64: 1>, scalar_prefetch = 0 : i64, scratch_operands = 0 : i64, tpu.core_type = #tpu.core_type<tc>, window_params = [{transform_indices = @transform_0, window_bounds = array<i64: 16, 2048>}, {transform_indices = @transform_1, window_bounds = array<i64: 16, 256>}, {pipeline_mode = #tpu.pipeline_mode<synchronous>, transform_indices = @transform_2, window_bounds = array<i64: 2048, 256>}, {pipeline_mode = #tpu.pipeline_mode<synchronous>, transform_indices = @transform_3, window_bounds = array<i64: 256, 256>}, {pipeline_mode = #tpu.pipeline_mode<synchronous>, transform_indices = @transform_4, window_bounds = array<i64: 1, 256>}, {transform_indices = @transform_5, window_bounds = array<i64: 16, 256>}]} {
    %c0 = arith.constant 0 : index
    %c0_0 = arith.constant 0 : index
    %0 = vector.load %arg1[%c0, %c0_0] : memref<16x2048xbf16, #tpu.memory_space<vmem>>, vector<16x2048xbf16>
    %c0_1 = arith.constant 0 : index
    %c0_2 = arith.constant 0 : index
    %1 = vector.load %arg3[%c0_1, %c0_2] : memref<2048x256xbf16, #tpu.memory_space<vmem>>, vector<2048x256xbf16>
    %cst = arith.constant dense<0.000000e+00> : vector<16x256xf32>
    %2 = tpu.matmul %0, %1, %cst {dimension_numbers = #tpu.dot_dimension_numbers<[1], [0], [0], [1], [0, 0, 1, 1], [], []>} : vector<16x2048xbf16>, vector<2048x256xbf16>, vector<16x256xf32> -> vector<16x256xf32>
    %c0_3 = arith.constant 0 : index
    %c0_4 = arith.constant 0 : index
    %3 = vector.load %arg5[%c0_3, %c0_4] : memref<1x256xf32, #tpu.memory_space<vmem>>, vector<1x256xf32>
    %4 = vector.broadcast %3 : vector<1x256xf32> to vector<16x256xf32>
    %5 = arith.addf %2, %4 : vector<16x256xf32>
    %c0_5 = arith.constant 0 : index
    %c0_6 = arith.constant 0 : index
    %6 = vector.load %arg2[%c0_5, %c0_6] : memref<16x256xf32, #tpu.memory_space<vmem>>, vector<16x256xf32>
    %7 = arith.addf %6, %5 : vector<16x256xf32>
    %8 = arith.truncf %6 : vector<16x256xf32> to vector<16x256xbf16>
    %c0_7 = arith.constant 0 : index
    %c0_8 = arith.constant 0 : index
    %9 = vector.load %arg4[%c0_7, %c0_8] : memref<256x256xbf16, #tpu.memory_space<vmem>>, vector<256x256xbf16>
    %cst_9 = arith.constant dense<0.000000e+00> : vector<16x256xf32>
    %10 = tpu.matmul %8, %9, %cst_9 {dimension_numbers = #tpu.dot_dimension_numbers<[1], [0], [0], [1], [0, 0, 1, 1], [], []>} : vector<16x256xbf16>, vector<256x256xbf16>, vector<16x256xf32> -> vector<16x256xf32>
    %11 = arith.addf %7, %10 : vector<16x256xf32>
    %12 = arith.addf %11, %5 : vector<16x256xf32>
    %13 = arith.truncf %11 : vector<16x256xf32> to vector<16x256xbf16>
    %c0_10 = arith.constant 0 : index
    %c0_11 = arith.constant 0 : index
    %14 = vector.load %arg4[%c0_10, %c0_11] : memref<256x256xbf16, #tpu.memory_space<vmem>>, vector<256x256xbf16>
    %cst_12 = arith.constant dense<0.000000e+00> : vector<16x256xf32>
    %15 = tpu.matmul %13, %14, %cst_12 {dimension_numbers = #tpu.dot_dimension_numbers<[1], [0], [0], [1], [0, 0, 1, 1], [], []>} : vector<16x256xbf16>, vector<256x256xbf16>, vector<16x256xf32> -> vector<16x256xf32>
    %16 = arith.addf %12, %15 : vector<16x256xf32>
    %17 = arith.addf %16, %5 : vector<16x256xf32>
    %18 = arith.truncf %16 : vector<16x256xf32> to vector<16x256xbf16>
    %c0_13 = arith.constant 0 : index
    %c0_14 = arith.constant 0 : index
    %19 = vector.load %arg4[%c0_13, %c0_14] : memref<256x256xbf16, #tpu.memory_space<vmem>>, vector<256x256xbf16>
    %cst_15 = arith.constant dense<0.000000e+00> : vector<16x256xf32>
    %20 = tpu.matmul %18, %19, %cst_15 {dimension_numbers = #tpu.dot_dimension_numbers<[1], [0], [0], [1], [0, 0, 1, 1], [], []>} : vector<16x256xbf16>, vector<256x256xbf16>, vector<16x256xf32> -> vector<16x256xf32>
    %21 = arith.addf %17, %20 : vector<16x256xf32>
    %c0_16 = arith.constant 0 : index
    %c0_17 = arith.constant 0 : index
    %22 = vector.load %arg6[%c0_16, %c0_17] : memref<16x256xf32, #tpu.memory_space<vmem>>, vector<16x256xf32>
    tpu.vector_store %arg6[%c0_16, %c0_17], %21 {strides = array<i32>} : memref<16x256xf32, #tpu.memory_space<vmem>>, vector<16x256xf32>,
    return
  }
  func.func @transform_0(%arg0: i32) -> (i32, i32) {
    %c0_i32 = arith.constant 0 : i32
    %c0_i32_0 = arith.constant 0 : i32
    return %arg0, %c0_i32 : i32, i32
  }
  func.func @transform_1(%arg0: i32) -> (i32, i32) {
    %c0_i32 = arith.constant 0 : i32
    %c0_i32_0 = arith.constant 0 : i32
    return %arg0, %c0_i32 : i32, i32
  }
  func.func @transform_2(%arg0: i32) -> (i32, i32) {
    %c0_i32 = arith.constant 0 : i32
    %c0_i32_0 = arith.constant 0 : i32
    %c0_i32_1 = arith.constant 0 : i32
    return %c0_i32, %c0_i32_0 : i32, i32
  }
  func.func @transform_3(%arg0: i32) -> (i32, i32) {
    %c0_i32 = arith.constant 0 : i32
    %c0_i32_0 = arith.constant 0 : i32
    %c0_i32_1 = arith.constant 0 : i32
    return %c0_i32, %c0_i32_0 : i32, i32
  }
  func.func @transform_4(%arg0: i32) -> (i32, i32) {
    %c0_i32 = arith.constant 0 : i32
    %c0_i32_0 = arith.constant 0 : i32
    %c0_i32_1 = arith.constant 0 : i32
    return %c0_i32, %c0_i32_0 : i32, i32
  }
  func.func @transform_5(%arg0: i32) -> (i32, i32) {
    %c0_i32 = arith.constant 0 : i32
    %c0_i32_0 = arith.constant 0 : i32
    return %arg0, %c0_i32 : i32, i32
  }
}

</mosaic_0001>

<bundles_post_ra>
// kernel: regressor_state.1
= control target key start
LH: loop header
LB: loop body
LE: loop exit
PB: predicated region body
PF: predicated region fallthrough
CT: control target
= control target key end

     0   :  { %10 = vsyncpa [#allocation3], 0  ;;  %s3606_s0 = inlined_call_operand.vmem [shape: bf16[16,2048], index: 0, kind: input, shape index: {}]   ;;  %s3607_s1 = inlined_call_operand.vmem [shape: f32[16,256], index: 1, kind: input, shape index: {}]   ;;  %s3608_s2 = inlined_call_operand.hbm [shape: bf16[2048,256], index: 2, kind: input, shape index: {}]   ;;  %s3609_s3 = inlined_call_operand.hbm [shape: bf16[256,256], index: 3, kind: input, shape index: {}]   ;;  %s3610_s4 = inlined_call_operand.vmem [shape: f32[1,256], index: 4, kind: input, shape index: {}]   ;;  %s3611_s5 = inlined_call_operand.vmem [shape: f32[16,256], index: 5, kind: output, shape index: {}]  }
   0x1   :  { %11 = vsyncpa [#allocation5], 0  ;;  %s3221_s18 = smov [#allocation2]   ;;  %s3173_s22 = scalar_lea.hbm %s3608_s2, 32768 }
   0x2   :  { %s21_s19 = sshll.u32 %s3221_s18, 4  ;;  %p3174_p0 = scmp.ne.s32.totalorder %s3608_s2, %s3173_s22  ;;  %s22_s19 = int_to_ptr.vmem [resolvable:$true] %s21_s19 }
   0x3   :  { %p3177_p1 = scmp.lt.u32.totalorder %s3173_s22, %s3608_s2 }
   0x5   :  { %p3179_p2 = pnand %p3177_p1, %p3174_p0 }
   0x7   :  { %3182 = shalt.err (!%p3179_p2)
}
   0x8   :  { %s3183_s27 = scalar_lea.vmem %s22_s19, 32768  ;;  %p3188_p4 = scmp.lt.s32.totalorder %s22_s19, %s22_s19 }
   0x9   :  { %p3184_p3 = scmp.ne.s32.totalorder %s22_s19, %s3183_s27  ;;  %p3189_p5 = scmp.lt.s32.totalorder %s3183_s27, %s3183_s27 }
   0xb   :  { %p3190_p6 = por %p3189_p5, %p3188_p4 }
   0xd   :  { %p3191_p7 = pnand %p3190_p6, %p3184_p3 }
   0xf   :  { %3194 = shalt.err (!%p3191_p7)
}
  0x10   :  { %s3222_s28 = smov 128   ;;  %s3223_s29 = smov 8  }
  0x11   :  { %27 = dma.hbm_to_vmem [thread:$0]  %s3608_s2, 32768, %s22_s19, [#allocation3], %s3222_s28, %s3222_s28, %s3223_s29  }
  0x12   :  { %s3224_s7 = smov [#allocation4]   ;;  %s3195_s11 = scalar_lea.hbm %s3609_s3, 4096 }
  0x13   :  { %s33_s8 = sshll.u32 %s3224_s7, 4  ;;  %p3196_p8 = scmp.ne.s32.totalorder %s3609_s3, %s3195_s11  ;;  %s34_s8 = int_to_ptr.vmem [resolvable:$true] %s33_s8 }
  0x14   :  { %p3199_p9 = scmp.lt.u32.totalorder %s3195_s11, %s3609_s3 }
  0x16   :  { %p3201_p10 = pnand %p3199_p9, %p3196_p8 }
  0x18   :  { %3204 = shalt.err (!%p3201_p10)
}
  0x19   :  { %s3205_s16 = scalar_lea.vmem %s34_s8, 4096  ;;  %p3210_p12 = scmp.lt.s32.totalorder %s34_s8, %s34_s8 }
  0x1a   :  { %p3206_p11 = scmp.ne.s32.totalorder %s34_s8, %s3205_s16  ;;  %p3211_p13 = scmp.lt.s32.totalorder %s3205_s16, %s3205_s16 }
  0x1c   :  { %p3212_p0 = por %p3211_p13, %p3210_p12 }
  0x1e   :  { %p3213_p1 = pnand %p3212_p0, %p3206_p11 }
  0x20   :  { %3216 = shalt.err (!%p3213_p1)
}
  0x21   :  { %39 = dma.hbm_to_vmem [thread:$0]  %s3609_s3, 4096, %s34_s8, [#allocation5], %s3222_s28, %s3222_s28, %s3223_s29  }
  0x22   :  { %3217 = dma.done.wait [#allocation3], 32768  }
  0x23   :  { %3218 = vsyncadd [#allocation3], 4294934528 }
  0x24   :  { %3219 = dma.done.wait [#allocation5], 4096  }
  0x25   :  { %3220 = vsyncadd [#allocation5], 4294963200  ;;  %v2741_v0 = vld [vmem:[#allocation2 + $0x204] ss:$8 sps:$4 sm:$0xff]   ;;  %v2743_v1 = vld [vmem:[#allocation2 + $0x200] ss:$8 sps:$4 sm:$0xff]  }
  0x26   :  { %1778 = vmatprep.subr.bf16.mxu0 %v2741_v0  ;;  %v2744_v2 = vld [vmem:[#allocation2 + $0x214] ss:$8 sps:$4 sm:$0xff]   ;;  %v2746_v3 = vld [vmem:[#allocation2 + $0x210] ss:$8 sps:$4 sm:$0xff]   ;;  %v2747_v4 = vld [vmem:[#allocation2 + $0x224] ss:$8 sps:$4 sm:$0xff]  }
  0x27   :  { %1779 = vmatpush1.bf16.msra.mxu0 %v2743_v1  ;;  %v2749_v5 = vld [vmem:[#allocation2 + $0x220] ss:$8 sps:$4 sm:$0xff]   ;;  %v2750_v6 = vld [vmem:[#allocation2 + $0x234] ss:$8 sps:$4 sm:$0xff]   ;;  %v2752_v7 = vld [vmem:[#allocation2 + $0x230] ss:$8 sps:$4 sm:$0xff]  }
  0x28   :  { %1780 = vmatprep.subr.bf16.mxu0 %v2744_v2  ;;  %v2753_v8 = vld [vmem:[#allocation2 + $0x244] ss:$8 sps:$4 sm:$0xff]   ;;  %v2755_v9 = vld [vmem:[#allocation2 + $0x240] ss:$8 sps:$4 sm:$0xff]   ;;  %v2756_v10 = vld [vmem:[#allocation2 + $0x254] ss:$8 sps:$4 sm:$0xff]  }
  0x29   :  { %v2758_v11 = vld [vmem:[#allocation2 + $0x250] ss:$8 sps:$4 sm:$0xff]   ;;  %v2759_v12 = vld [vmem:[#allocation2 + $0x264] ss:$8 sps:$4 sm:$0xff]   ;;  %v2761_v16 = vld [vmem:[#allocation2 + $0x260] ss:$8 sps:$4 sm:$0xff]  }
  0x2a   :  { %v3282_v13 = vld [vmem:[%s3606_s0 + $0x10] sm:$0xff]  ;;  %v2765_v19 = vld [vmem:[#allocation2 + $0x284] ss:$8 sps:$4 sm:$0xff]   ;;  %v2767_v20 = vld [vmem:[#allocation2 + $0x280] ss:$8 sps:$4 sm:$0xff]  }
  0x2b   :  { %1781 = vmatpush1.bf16.msra.mxu0 %v2746_v3  ;;  %v3287_v14 = vld [vmem:[%s3606_s0 + $0x50] sm:$0xff]  ;;  %v2771_v23 = vld [vmem:[#allocation2 + $0x2a4] ss:$8 sps:$4 sm:$0xff]   ;;  %v2773_v24 = vld [vmem:[#allocation2 + $0x2a0] ss:$8 sps:$4 sm:$0xff]  }
  0x2c   :  { %1782 = vmatprep.subr.bf16.mxu0 %v2747_v4  ;;  %v2406_v15 = vcombine.high %v3282_v13, %v3287_v14  ;;  %v2762_v17 = vld [vmem:[#allocation2 + $0x274] ss:$8 sps:$4 sm:$0xff]   ;;  %v2764_v18 = vld [vmem:[#allocation2 + $0x270] ss:$8 sps:$4 sm:$0xff]   ;;  %v2777_v27 = vld [vmem:[#allocation2 + $0x2c4] ss:$8 sps:$4 sm:$0xff]   ;;  %v2405_v48 = vcombine.low %v3282_v13, %v3287_v14 }
  0x2d   :  { %v2768_v21 = vld [vmem:[#allocation2 + $0x294] ss:$8 sps:$4 sm:$0xff]   ;;  %v2770_v22 = vld [vmem:[#allocation2 + $0x290] ss:$8 sps:$4 sm:$0xff]   ;;  %v2840_v28 = vld [vmem:[#allocation2 + $0x4] ss:$8 sps:$4 sm:$0xff]  }
  0x2e   :  { %1810 = vmatprep.mubr.bf16.mxu0 %v2406_v15  ;;  %v2774_v25 = vld [vmem:[#allocation2 + $0x2b4] ss:$8 sps:$4 sm:$0xff]   ;;  %v2776_v26 = vld [vmem:[#allocation2 + $0x2b0] ss:$8 sps:$4 sm:$0xff]   ;;  %v2842_v29 = vld [vmem:[#allocation2] ss:$8 sps:$4 sm:$0xff]   ;;  %1692 = vmatprep.subr.bf16.mxu1 %v2840_v28 }
  0x2f   :  { %1783 = vmatpush1.bf16.msra.mxu0 %v2749_v5  ;;  %v2779_v30 = vld [vmem:[#allocation2 + $0x2c0] ss:$8 sps:$4 sm:$0xff]   ;;  %v2780_v31 = vld [vmem:[#allocation2 + $0x2d4] ss:$8 sps:$4 sm:$0xff]   ;;  %1693 = vmatpush1.bf16.msra.mxu1 %v2842_v29  ;;  %v2848_v33 = vld [vmem:[#allocation2 + $0x10] ss:$8 sps:$4 sm:$0xff]  }
  0x30   :  { %1784 = vmatprep.subr.bf16.mxu0 %v2750_v6  ;;  %v2846_v32 = vld [vmem:[#allocation2 + $0x14] ss:$8 sps:$4 sm:$0xff]   ;;  %v2782_v34 = vld [vmem:[#allocation2 + $0x2d0] ss:$8 sps:$4 sm:$0xff]   ;;  %v2852_v35 = vld [vmem:[#allocation2 + $0x24] ss:$8 sps:$4 sm:$0xff]  }
  0x31   :  { %1694 = vmatprep.subr.bf16.mxu1 %v2846_v32  ;;  %v2783_v36 = vld [vmem:[#allocation2 + $0x2e4] ss:$8 sps:$4 sm:$0xff]   ;;  %v2854_v37 = vld [vmem:[#allocation2 + $0x20] ss:$8 sps:$4 sm:$0xff]   ;;  %v2858_v38 = vld [vmem:[#allocation2 + $0x34] ss:$8 sps:$4 sm:$0xff]  }
  0x32   :  { %v2785_v39 = vld [vmem:[#allocation2 + $0x2e0] ss:$8 sps:$4 sm:$0xff]   ;;  %v2786_v40 = vld [vmem:[#allocation2 + $0x2f4] ss:$8 sps:$4 sm:$0xff]   ;;  %v2860_v41 = vld [vmem:[#allocation2 + $0x30] ss:$8 sps:$4 sm:$0xff]  }
  0x33   :  { %1785 = vmatpush1.bf16.msra.mxu0 %v2752_v7  ;;  %1695 = vmatpush1.bf16.msra.mxu1 %v2848_v33  ;;  %v2788_v42 = vld [vmem:[#allocation2 + $0x2f0] ss:$8 sps:$4 sm:$0xff]   ;;  %v2864_v43 = vld [vmem:[#allocation2 + $0x44] ss:$8 sps:$4 sm:$0xff]   ;;  %v2866_v47 = vld [vmem:[#allocation2 + $0x40] ss:$8 sps:$4 sm:$0xff]  }
  0x34   :  { %1786 = vmatprep.subr.bf16.mxu0 %v2753_v8  ;;  %1696 = vmatprep.subr.bf16.mxu1 %v2852_v35  ;;  %v2791_v44 = vld [vmem:[#allocation2 + $0x304] ss:$8 sps:$4 sm:$0xff]   ;;  %v3294_v45 = vld [vmem:[%s3606_s0 + $0x18] sm:$0xff]  ;;  %v2789_v50 = vld [vmem:[#allocation2 + $0x300] ss:$8 sps:$4 sm:$0xff]  }
  0x35   :  { %v3299_v46 = vld [vmem:[%s3606_s0 + $0x58] sm:$0xff]  ;;  %v2876_v54 = vld [vmem:[#allocation2 + $0x64] ss:$8 sps:$4 sm:$0xff]   ;;  %v2878_v57 = vld [vmem:[#allocation2 + $0x60] ss:$8 sps:$4 sm:$0xff]  }
  0x36   :  { %v2870_v49 = vld [vmem:[#allocation2 + $0x54] ss:$8 sps:$4 sm:$0xff]   ;;  %v2408_v51 = vcombine.high %v3294_v45, %v3299_v46  ;;  %v2872_v53 = vld [vmem:[#allocation2 + $0x50] ss:$8 sps:$4 sm:$0xff]   ;;  %v2797_v56 = vld [vmem:[#allocation2 + $0x324] ss:$8 sps:$4 sm:$0xff]  }
  0x37   :  { %1787 = vmatpush1.bf16.msra.mxu0 %v2755_v9  ;;  %1697 = vmatpush1.bf16.msra.mxu1 %v2854_v37  ;;  %v2794_v52 = vld [vmem:[#allocation2 + $0x314] ss:$8 sps:$4 sm:$0xff]   ;;  %v2792_v55 = vld [vmem:[#allocation2 + $0x310] ss:$8 sps:$4 sm:$0xff]   ;;  %v2795_v59 = vld [vmem:[#allocation2 + $0x320] ss:$8 sps:$4 sm:$0xff]  }
  0x38   :  { %1788 = vmatprep.subr.bf16.mxu0 %v2756_v10  ;;  %1698 = vmatprep.subr.bf16.mxu1 %v2858_v38  ;;  %v2882_v58 = vld [vmem:[#allocation2 + $0x74] ss:$8 sps:$4 sm:$0xff]   ;;  %v2884_v61 = vld [vmem:[#allocation2 + $0x70] ss:$8 sps:$4 sm:$0xff]   ;;  %v2888_v62 = vld [vmem:[#allocation2 + $0x84] ss:$8 sps:$4 sm:$0xff]  }
  0x39   :  { %v2800_v60 = vld [vmem:[#allocation2 + $0x334] ss:$8 sps:$4 sm:$0xff]   ;;  %v2798_v63 = vld [vmem:[#allocation2 + $0x330] ss:$8 sps:$4 sm:$0xff]   ;;  %v2803_v0 = vld [vmem:[#allocation2 + $0x344] ss:$8 sps:$4 sm:$0xff]  }
  0x3a   :  { %v2890_v1 = vld [vmem:[#allocation2 + $0x80] ss:$8 sps:$4 sm:$0xff]   ;;  %v2894_v2 = vld [vmem:[#allocation2 + $0x94] ss:$8 sps:$4 sm:$0xff]   ;;  %v2896_v5 = vld [vmem:[#allocation2 + $0x90] ss:$8 sps:$4 sm:$0xff]  }
  0x3b   :  { %1789 = vmatpush1.bf16.msra.mxu0 %v2758_v11  ;;  %1699 = vmatpush1.bf16.msra.mxu1 %v2860_v41  ;;  %v2801_v3 = vld [vmem:[#allocation2 + $0x340] ss:$8 sps:$4 sm:$0xff]   ;;  %v2806_v4 = vld [vmem:[#allocation2 + $0x354] ss:$8 sps:$4 sm:$0xff]   ;;  %v2900_v6 = vld [vmem:[#allocation2 + $0xa4] ss:$8 sps:$4 sm:$0xff]  }
  0x3c   :  { %1790 = vmatprep.subr.bf16.mxu0 %v2759_v12  ;;  %1700 = vmatprep.subr.bf16.mxu1 %v2864_v43  ;;  %v2804_v7 = vld [vmem:[#allocation2 + $0x350] ss:$8 sps:$4 sm:$0xff]   ;;  %v2809_v8 = vld [vmem:[#allocation2 + $0x364] ss:$8 sps:$4 sm:$0xff]   ;;  %v2902_v9 = vld [vmem:[#allocation2 + $0xa0] ss:$8 sps:$4 sm:$0xff]  }
  0x3d   :  { %v2906_v10 = vld [vmem:[#allocation2 + $0xb4] ss:$8 sps:$4 sm:$0xff]   ;;  %v2807_v11 = vld [vmem:[#allocation2 + $0x360] ss:$8 sps:$4 sm:$0xff]   ;;  %v2908_v13 = vld [vmem:[#allocation2 + $0xb0] ss:$8 sps:$4 sm:$0xff]  }
  0x3e   :  { %v2812_v12 = vld [vmem:[#allocation2 + $0x374] ss:$8 sps:$4 sm:$0xff]   ;;  %v48_v14 = vld [vmem:[%s3606_s0] sm:$0xff]  ;;  %v2932_v32 = vld [vmem:[#allocation2 + $0xf0] ss:$8 sps:$4 sm:$0xff]  }
  0x3f   :  { %1791 = vmatpush1.bf16.msra.mxu0 %v2761_v16  ;;  %1701 = vmatpush1.bf16.msra.mxu1 %v2866_v47  ;;  %v56_v15 = vld [vmem:[%s3606_s0 + $0x40] sm:$0xff]  ;;  %v2930_v29 = vld [vmem:[#allocation2 + $0xf4] ss:$8 sps:$4 sm:$0xff]   ;;  %v2942_v41 = vld [vmem:[#allocation2 + $0x110] ss:$8 sps:$4 sm:$0xff]  }
  0x40   :  { %1792 = vmatprep.subr.bf16.mxu0 %v2762_v17  ;;  %1702 = vmatprep.subr.bf16.mxu1 %v2870_v49  ;;  %v2912_v16 = vld [vmem:[#allocation2 + $0xc4] ss:$8 sps:$4 sm:$0xff]   ;;  %v2402_v17 = vcombine.high %v48_v14, %v56_v15  ;;  %v2926_v28 = vld [vmem:[#allocation2 + $0xe0] ss:$8 sps:$4 sm:$0xff]   ;;  %v2944_v38 = vld [vmem:[#allocation2 + $0x114] ss:$8 sps:$4 sm:$0xff]  }
  0x41   :  { %v2938_v33 = vld [vmem:[#allocation2 + $0x104] ss:$8 sps:$4 sm:$0xff]   ;;  %v2936_v37 = vld [vmem:[#allocation2 + $0x100] ss:$8 sps:$4 sm:$0xff]   ;;  %v2828_v43 = vld [vmem:[#allocation2 + $0x3d0] ss:$8 sps:$4 sm:$0xff]  }
  0x42   :  { %1724 = vmatprep.mubr.bf16.mxu1 %v2402_v17  ;;  %v2827_v35 = vld [vmem:[#allocation2 + $0x3c4] ss:$8 sps:$4 sm:$0xff]   ;;  %v2948_v47 = vld [vmem:[#allocation2 + $0x120] ss:$8 sps:$4 sm:$0xff]  }
  0x43   :  { %1793 = vmatpush1.bf16.msra.mxu0 %v2764_v18  ;;  %1703 = vmatpush1.bf16.msra.mxu1 %v2872_v53  ;;  %v2810_v18 = vld [vmem:[#allocation2 + $0x370] ss:$8 sps:$4 sm:$0xff]   ;;  %v2831_v49 = vld [vmem:[#allocation2 + $0x3e0] ss:$8 sps:$4 sm:$0xff]   ;;  %v2962_v53 = vld [vmem:[#allocation2 + $0x144] ss:$8 sps:$4 sm:$0xff]  }
  0x44   :  { %1794 = vmatprep.subr.bf16.mxu0 %v2765_v19  ;;  %1704 = vmatprep.subr.bf16.mxu1 %v2876_v54  ;;  %v2815_v19 = vld [vmem:[#allocation2 + $0x384] ss:$8 sps:$4 sm:$0xff]  }
  0x45   :  { %v2839_v54 = vld [vmem:[#allocation2 + $0x404] ss:$8 sps:$4 sm:$0xff]  }
  0x46   :  { %v2998_v17 = vld [vmem:[#allocation2 + $0x1a4] ss:$8 sps:$4 sm:$0xff]  }
  0x47   :  { %1795 = vmatpush1.bf16.msra.mxu0 %v2767_v20  ;;  %1705 = vmatpush1.bf16.msra.mxu1 %v2878_v57  ;;  %v2914_v20 = vld [vmem:[#allocation2 + $0xc0] ss:$8 sps:$4 sm:$0xff]  }
  0x48   :  { %1796 = vmatprep.subr.bf16.mxu0 %v2768_v21  ;;  %1706 = vmatprep.subr.bf16.mxu1 %v2882_v58  ;;  %v2918_v21 = vld [vmem:[#allocation2 + $0xd4] ss:$8 sps:$4 sm:$0xff]   ;;  %v2960_v57 = vld [vmem:[#allocation2 + $0x140] ss:$8 sps:$4 sm:$0xff]   ;;  %v2407_v58 = vcombine.low %v3294_v45, %v3299_v46 }
  0x49   :  { %v2972_v45 = vld [vmem:[#allocation2 + $0x160] ss:$8 sps:$4 sm:$0xff]  }
  0x4a   :  { %v3328_v46 = vld [vmem:[%s3606_s0 + $0x8] sm:$0xff] }
  0x4b   :  { %1797 = vmatpush1.bf16.msra.mxu0 %v2770_v22  ;;  %1707 = vmatpush1.bf16.msra.mxu1 %v2884_v61  ;;  %v2813_v22 = vld [vmem:[#allocation2 + $0x380] ss:$8 sps:$4 sm:$0xff]  }
  0x4c   :  { %1798 = vmatprep.subr.bf16.mxu0 %v2771_v23  ;;  %1708 = vmatprep.subr.bf16.mxu1 %v2888_v62  ;;  %v2818_v23 = vld [vmem:[#allocation2 + $0x394] ss:$8 sps:$4 sm:$0xff]  }
  0x4d   :  { %v2845_v62 = vld [vmem:[#allocation2 + $0x414] ss:$8 sps:$4 sm:$0xff]  }
  0x4f   :  { %1799 = vmatpush1.bf16.msra.mxu0 %v2773_v24  ;;  %1709 = vmatpush1.bf16.msra.mxu1 %v2890_v1  ;;  %v2920_v24 = vld [vmem:[#allocation2 + $0xd0] ss:$8 sps:$4 sm:$0xff]  }
  0x50   :  { %1800 = vmatprep.subr.bf16.mxu0 %v2774_v25  ;;  %1710 = vmatprep.subr.bf16.mxu1 %v2894_v2  ;;  %v2924_v25 = vld [vmem:[#allocation2 + $0xe4] ss:$8 sps:$4 sm:$0xff]   ;;  %v2843_v1 = vld [vmem:[#allocation2 + $0x410] ss:$8 sps:$4 sm:$0xff]  }
  0x51   :  { %v2851_v2 = vld [vmem:[#allocation2 + $0x424] ss:$8 sps:$4 sm:$0xff]  }
  0x53   :  { %1801 = vmatpush1.bf16.msra.mxu0 %v2776_v26  ;;  %1711 = vmatpush1.bf16.msra.mxu1 %v2896_v5  ;;  %v2816_v26 = vld [vmem:[#allocation2 + $0x390] ss:$8 sps:$4 sm:$0xff]   ;;  %v2980_v5 = vld [vmem:[#allocation2 + $0x174] ss:$8 sps:$4 sm:$0xff]  }
  0x54   :  { %1802 = vmatprep.subr.bf16.mxu0 %v2777_v27  ;;  %1712 = vmatprep.subr.bf16.mxu1 %v2900_v6  ;;  %v2821_v27 = vld [vmem:[#allocation2 + $0x3a4] ss:$8 sps:$4 sm:$0xff]  }
  0x57   :  { %1803 = vmatpush1.bf16.msra.mxu0 %v2779_v30  ;;  %1713 = vmatpush1.bf16.msra.mxu1 %v2902_v9  ;;  %v2819_v30 = vld [vmem:[#allocation2 + $0x3a0] ss:$8 sps:$4 sm:$0xff]   ;;  %v2986_v9 = vld [vmem:[#allocation2 + $0x184] ss:$8 sps:$4 sm:$0xff]  }
  0x58   :  { %1804 = vmatprep.subr.bf16.mxu0 %v2780_v31  ;;  %1714 = vmatprep.subr.bf16.mxu1 %v2906_v10  ;;  %v2824_v31 = vld [vmem:[#allocation2 + $0x3b4] ss:$8 sps:$4 sm:$0xff]   ;;  %v2855_v10 = vld [vmem:[#allocation2 + $0x430] ss:$8 sps:$4 sm:$0xff]  }
  0x5b   :  { %1805 = vmatpush1.bf16.msra.mxu0 %v2782_v34  ;;  %1715 = vmatpush1.bf16.msra.mxu1 %v2908_v13  ;;  %v2822_v34 = vld [vmem:[#allocation2 + $0x3b0] ss:$8 sps:$4 sm:$0xff]   ;;  %v2992_v13 = vld [vmem:[#allocation2 + $0x194] ss:$8 sps:$4 sm:$0xff]  }
  0x5c   :  { %1806 = vmatprep.subr.bf16.mxu0 %v2783_v36  ;;  %1716 = vmatprep.subr.bf16.mxu1 %v2912_v16  ;;  %v2401_v36 = vcombine.low %v48_v14, %v56_v15  ;;  %v2861_v14 = vld [vmem:[#allocation2 + $0x440] ss:$8 sps:$4 sm:$0xff]   ;;  %v2869_v15 = vld [vmem:[#allocation2 + $0x454] ss:$8 sps:$4 sm:$0xff]   ;;  %v2990_v16 = vld [vmem:[#allocation2 + $0x190] ss:$8 sps:$4 sm:$0xff]  }
  0x5f   :  { %1807 = vmatpush1.bf16.msra.mxu0 %v2785_v39  ;;  %1717 = vmatpush1.bf16.msra.mxu1 %v2914_v20  ;;  %v2825_v39 = vld [vmem:[#allocation2 + $0x3c0] ss:$8 sps:$4 sm:$0xff]  }
  0x60   :  { %1808 = vmatprep.subr.bf16.mxu0 %v2786_v40  ;;  %1718 = vmatprep.subr.bf16.mxu1 %v2918_v21  ;;  %v2830_v40 = vld [vmem:[#allocation2 + $0x3d4] ss:$8 sps:$4 sm:$0xff]   ;;  %v2996_v20 = vld [vmem:[#allocation2 + $0x1a0] ss:$8 sps:$4 sm:$0xff]  }
  0x61   :  { %v3004_v21 = vld [vmem:[#allocation2 + $0x1b4] ss:$8 sps:$4 sm:$0xff]  }
  0x63   :  { %1809 = vmatpush1.bf16.msra.mxu0 %v2788_v42  ;;  %1719 = vmatpush1.bf16.msra.mxu1 %v2920_v24  ;;  %v2950_v42 = vld [vmem:[#allocation2 + $0x124] ss:$8 sps:$4 sm:$0xff]   ;;  %v3002_v24 = vld [vmem:[#allocation2 + $0x1b0] ss:$8 sps:$4 sm:$0xff]  }
  0x64   :  { %1821 = vmatprep.subr.bf16.mxu0 %v2791_v44  ;;  %1720 = vmatprep.subr.bf16.mxu1 %v2924_v25  ;;  %v2833_v44 = vld [vmem:[#allocation2 + $0x3e4] ss:$8 sps:$4 sm:$0xff]  }
  0x65   :  { %v3010_v25 = vld [vmem:[#allocation2 + $0x1c4] ss:$8 sps:$4 sm:$0xff]  }
  0x66   :  { %1811 = vmatmul.mubr.bf16.vlgmr.msra.gmra.mrb[0].mxu0 %v2405_v48  ;;  %v2956_v48 = vld [vmem:[#allocation2 + $0x134] ss:$8 sps:$4 sm:$0xff]  }
  0x67   :  { %1822 = vmatpush1.bf16.msra.mxu0 %v2789_v50  ;;  %1853 = vmatprep.mubr.bf16.mxu0 %v2408_v51  ;;  %v2836_v50 = vld [vmem:[#allocation2 + $0x3f4] ss:$8 sps:$4 sm:$0xff]   ;;  %v2954_v51 = vld [vmem:[#allocation2 + $0x130] ss:$8 sps:$4 sm:$0xff]  }
  0x68   :  { %1823 = vmatprep.subr.bf16.mxu0 %v2794_v52  ;;  %1721 = vmatpush1.bf16.msra.mxu1 %v2926_v28  ;;  %v2834_v52 = vld [vmem:[#allocation2 + $0x3f0] ss:$8 sps:$4 sm:$0xff]   ;;  %v3008_v28 = vld [vmem:[#allocation2 + $0x1c0] ss:$8 sps:$4 sm:$0xff]  }
  0x69   :  { %1722 = vmatprep.subr.bf16.mxu1 %v2930_v29  ;;  %v3016_v29 = vld [vmem:[#allocation2 + $0x1d4] ss:$8 sps:$4 sm:$0xff]  }
  0x6b   :  { %1824 = vmatpush1.bf16.msra.mxu0 %v2792_v55  ;;  %v3314_v55 = vld [vmem:[%s3606_s0 + $0x20] sm:$0xff] }
  0x6c   :  { %1825 = vmatprep.subr.bf16.mxu0 %v2797_v56  ;;  %1723 = vmatpush1.bf16.msra.mxu1 %v2932_v32  ;;  %v3319_v56 = vld [vmem:[%s3606_s0 + $0x60] sm:$0xff]  ;;  %v3014_v32 = vld [vmem:[#allocation2 + $0x1d0] ss:$8 sps:$4 sm:$0xff]  }
  0x6d   :  { %1735 = vmatprep.subr.bf16.mxu1 %v2938_v33  ;;  %v2410_v61 = vcombine.high %v3314_v55, %v3319_v56  ;;  %v3022_v33 = vld [vmem:[#allocation2 + $0x1e4] ss:$8 sps:$4 sm:$0xff]  }
  0x6f   :  { %1826 = vmatpush1.bf16.msra.mxu0 %v2795_v59  ;;  %1725 = vmatmul.mubr.bf16.vlgmr.msra.gmra.mrb[0].mxu1 %v2401_v36  ;;  %v2968_v59 = vld [vmem:[#allocation2 + $0x154] ss:$8 sps:$4 sm:$0xff]   ;;  %v3020_v36 = vld [vmem:[#allocation2 + $0x1e0] ss:$8 sps:$4 sm:$0xff]  }
  0x70   :  { %1827 = vmatprep.subr.bf16.mxu0 %v2800_v60  ;;  %1736 = vmatpush1.bf16.msra.mxu1 %v2936_v37  ;;  %v2837_v60 = vld [vmem:[#allocation2 + $0x400] ss:$8 sps:$4 sm:$0xff]   ;;  %v3028_v37 = vld [vmem:[#allocation2 + $0x1f4] ss:$8 sps:$4 sm:$0xff]  }
  0x71   :  { %1737 = vmatprep.subr.bf16.mxu1 %v2944_v38  ;;  %v2897_v38 = vld [vmem:[#allocation2 + $0x4a0] ss:$8 sps:$4 sm:$0xff]  }
  0x73   :  { %1828 = vmatpush1.bf16.msra.mxu0 %v2798_v63  ;;  %v2966_v63 = vld [vmem:[#allocation2 + $0x150] ss:$8 sps:$4 sm:$0xff]  }
  0x74   :  { %1829 = vmatprep.subr.bf16.mxu0 %v2803_v0  ;;  %1738 = vmatpush1.bf16.msra.mxu1 %v2942_v41  ;;  %v2974_v0 = vld [vmem:[#allocation2 + $0x164] ss:$8 sps:$4 sm:$0xff]   ;;  %v2903_v41 = vld [vmem:[#allocation2 + $0x4b0] ss:$8 sps:$4 sm:$0xff]  }
  0x75   :  { %1739 = vmatprep.subr.bf16.mxu1 %v2950_v42  ;;  %v2911_v42 = vld [vmem:[#allocation2 + $0x4c4] ss:$8 sps:$4 sm:$0xff]  }
  0x77   :  { %1830 = vmatpush1.bf16.msra.mxu0 %v2801_v3  ;;  %v3333_v3 = vld [vmem:[%s3606_s0 + $0x48] sm:$0xff] }
  0x78   :  { %1831 = vmatprep.subr.bf16.mxu0 %v2806_v4  ;;  %1740 = vmatpush1.bf16.msra.mxu1 %v2948_v47  ;;  %v2849_v4 = vld [vmem:[#allocation2 + $0x420] ss:$8 sps:$4 sm:$0xff]   ;;  %v2404_v6 = vcombine.high %v3328_v46, %v3333_v3  ;;  %v2917_v47 = vld [vmem:[#allocation2 + $0x4d4] ss:$8 sps:$4 sm:$0xff]  }
  0x79   :  { %1741 = vmatprep.subr.bf16.mxu1 %v2956_v48  ;;  %v2915_v48 = vld [vmem:[#allocation2 + $0x4d0] ss:$8 sps:$4 sm:$0xff]  }
  0x7a   :  { %1767 = vmatprep.mubr.bf16.mxu1 %v2404_v6  ;;  %v3371_v6 = vld [vmem:[#allocation4 + $0x34] ss:$8 sps:$4 sm:$0xff]  }
  0x7b   :  { %1832 = vmatpush1.bf16.msra.mxu0 %v2804_v7  ;;  %v2857_v7 = vld [vmem:[#allocation2 + $0x434] ss:$8 sps:$4 sm:$0xff]  }
  0x7c   :  { %1833 = vmatprep.subr.bf16.mxu0 %v2809_v8  ;;  %1742 = vmatpush1.bf16.msra.mxu1 %v2954_v51  ;;  %v2978_v8 = vld [vmem:[#allocation2 + $0x170] ss:$8 sps:$4 sm:$0xff]   ;;  %v2929_v51 = vld [vmem:[#allocation2 + $0x4f4] ss:$8 sps:$4 sm:$0xff]  }
  0x7d   :  { %1743 = vmatprep.subr.bf16.mxu1 %v2962_v53  ;;  %v2935_v53 = vld [vmem:[#allocation2 + $0x504] ss:$8 sps:$4 sm:$0xff]  }
  0x7f   :  { %1834 = vmatpush1.bf16.msra.mxu0 %v2807_v11  ;;  %v2863_v11 = vld [vmem:[#allocation2 + $0x444] ss:$8 sps:$4 sm:$0xff]  }
  0x80   :  { %1835 = vmatprep.subr.bf16.mxu0 %v2812_v12  ;;  %1744 = vmatpush1.bf16.msra.mxu1 %v2960_v57  ;;  %v2984_v12 = vld [vmem:[#allocation2 + $0x180] ss:$8 sps:$4 sm:$0xff]  }
  0x81   :  { %1745 = vmatprep.subr.bf16.mxu1 %v2968_v59  ;;  %v3347_v57 = vld [vmem:[%s3606_s0 + $0x68] sm:$0xff] }
  0x82   :  { %v2933_v59 = vld [vmem:[#allocation2 + $0x500] ss:$8 sps:$4 sm:$0xff]  }
  0x83   :  { %1836 = vmatpush1.bf16.msra.mxu0 %v2810_v18  ;;  %v2867_v18 = vld [vmem:[#allocation2 + $0x450] ss:$8 sps:$4 sm:$0xff]  }
  0x84   :  { %1837 = vmatprep.subr.bf16.mxu0 %v2815_v19  ;;  %1746 = vmatpush1.bf16.msra.mxu1 %v2966_v63  ;;  %v2875_v19 = vld [vmem:[#allocation2 + $0x464] ss:$8 sps:$4 sm:$0xff]   ;;  %v3355_v63 = vld [vmem:[#allocation4] ss:$8 sps:$4 sm:$0xff]  }
  0x85   :  { %1747 = vmatprep.subr.bf16.mxu1 %v2974_v0  ;;  %v2939_v0 = vld [vmem:[#allocation2 + $0x510] ss:$8 sps:$4 sm:$0xff]  }
  0x87   :  { %1838 = vmatpush1.bf16.msra.mxu0 %v2813_v22  ;;  %v2873_v22 = vld [vmem:[#allocation2 + $0x460] ss:$8 sps:$4 sm:$0xff]  }
  0x88   :  { %1839 = vmatprep.subr.bf16.mxu0 %v2818_v23  ;;  %1748 = vmatpush1.bf16.msra.mxu1 %v2972_v45  ;;  %v2881_v23 = vld [vmem:[#allocation2 + $0x474] ss:$8 sps:$4 sm:$0xff]  }
  0x89   :  { %1749 = vmatprep.subr.bf16.mxu1 %v2980_v5  ;;  %v2953_v45 = vld [vmem:[#allocation2 + $0x534] ss:$8 sps:$4 sm:$0xff]   ;;  %v2959_v5 = vld [vmem:[#allocation2 + $0x544] ss:$8 sps:$4 sm:$0xff]  }
  0x8b   :  { %1840 = vmatpush1.bf16.msra.mxu0 %v2816_v26  ;;  %v2879_v26 = vld [vmem:[#allocation2 + $0x470] ss:$8 sps:$4 sm:$0xff]  }
  0x8c   :  { %1841 = vmatprep.subr.bf16.mxu0 %v2821_v27  ;;  %1750 = vmatpush1.bf16.msra.mxu1 %v2978_v8  ;;  %v2887_v27 = vld [vmem:[#allocation2 + $0x484] ss:$8 sps:$4 sm:$0xff]   ;;  %v2957_v8 = vld [vmem:[#allocation2 + $0x540] ss:$8 sps:$4 sm:$0xff]  }
  0x8d   :  { %1751 = vmatprep.subr.bf16.mxu1 %v2986_v9  ;;  %v2965_v9 = vld [vmem:[#allocation2 + $0x554] ss:$8 sps:$4 sm:$0xff]  }
  0x8f   :  { %1842 = vmatpush1.bf16.msra.mxu0 %v2819_v30  ;;  %v2885_v30 = vld [vmem:[#allocation2 + $0x480] ss:$8 sps:$4 sm:$0xff]  }
  0x90   :  { %1843 = vmatprep.subr.bf16.mxu0 %v2824_v31  ;;  %1752 = vmatpush1.bf16.msra.mxu1 %v2984_v12  ;;  %v2893_v31 = vld [vmem:[#allocation2 + $0x494] ss:$8 sps:$4 sm:$0xff]   ;;  %v2963_v12 = vld [vmem:[#allocation2 + $0x550] ss:$8 sps:$4 sm:$0xff]  }
  0x91   :  { %1753 = vmatprep.subr.bf16.mxu1 %v2992_v13  ;;  %v2971_v13 = vld [vmem:[#allocation2 + $0x564] ss:$8 sps:$4 sm:$0xff]  }
  0x93   :  { %1844 = vmatpush1.bf16.msra.mxu0 %v2822_v34  ;;  %v2891_v34 = vld [vmem:[#allocation2 + $0x490] ss:$8 sps:$4 sm:$0xff]  }
  0x94   :  { %1845 = vmatprep.subr.bf16.mxu0 %v2827_v35  ;;  %1754 = vmatpush1.bf16.msra.mxu1 %v2990_v16  ;;  %v2899_v35 = vld [vmem:[#allocation2 + $0x4a4] ss:$8 sps:$4 sm:$0xff]   ;;  %v2969_v16 = vld [vmem:[#allocation2 + $0x560] ss:$8 sps:$4 sm:$0xff]  }
  0x95   :  { %1755 = vmatprep.subr.bf16.mxu1 %v2998_v17  ;;  %v2977_v17 = vld [vmem:[#allocation2 + $0x574] ss:$8 sps:$4 sm:$0xff]  }
  0x97   :  { %1846 = vmatpush1.bf16.msra.mxu0 %v2825_v39  ;;  %v2905_v39 = vld [vmem:[#allocation2 + $0x4b4] ss:$8 sps:$4 sm:$0xff]  }
  0x98   :  { %1847 = vmatprep.subr.bf16.mxu0 %v2830_v40  ;;  %1756 = vmatpush1.bf16.msra.mxu1 %v2996_v20  ;;  %v3026_v40 = vld [vmem:[#allocation2 + $0x1f0] ss:$8 sps:$4 sm:$0xff]  }
  0x99   :  { %1757 = vmatprep.subr.bf16.mxu1 %v3004_v21  ;;  %v2975_v20 = vld [vmem:[#allocation2 + $0x570] ss:$8 sps:$4 sm:$0xff]   ;;  %v2983_v21 = vld [vmem:[#allocation2 + $0x584] ss:$8 sps:$4 sm:$0xff]  }
  0x9b   :  { %1848 = vmatpush1.bf16.msra.mxu0 %v2828_v43  ;;  %v2403_v43 = vcombine.low %v3328_v46, %v3333_v3  ;;  %v3365_v46 = vld [vmem:[#allocation4 + $0x24] ss:$8 sps:$4 sm:$0xff]   ;;  %v3367_v3 = vld [vmem:[#allocation4 + $0x20] ss:$8 sps:$4 sm:$0xff]  }
  0x9c   :  { %1849 = vmatprep.subr.bf16.mxu0 %v2833_v44  ;;  %1758 = vmatpush1.bf16.msra.mxu1 %v3002_v24  ;;  %v2909_v44 = vld [vmem:[#allocation2 + $0x4c0] ss:$8 sps:$4 sm:$0xff]  }
  0x9d   :  { %1759 = vmatprep.subr.bf16.mxu1 %v3010_v25  ;;  %v2981_v24 = vld [vmem:[#allocation2 + $0x580] ss:$8 sps:$4 sm:$0xff]   ;;  %v2989_v25 = vld [vmem:[#allocation2 + $0x594] ss:$8 sps:$4 sm:$0xff]  }
  0x9f   :  { %1850 = vmatpush1.bf16.msra.mxu0 %v2831_v49  ;;  %v2923_v49 = vld [vmem:[#allocation2 + $0x4e4] ss:$8 sps:$4 sm:$0xff]  }
  0xa0   :  { %1851 = vmatprep.subr.bf16.mxu0 %v2836_v50  ;;  %1760 = vmatpush1.bf16.msra.mxu1 %v3008_v28  ;;  %v2921_v50 = vld [vmem:[#allocation2 + $0x4e0] ss:$8 sps:$4 sm:$0xff]   ;;  %v2987_v28 = vld [vmem:[#allocation2 + $0x590] ss:$8 sps:$4 sm:$0xff]  }
  0xa1   :  { %1761 = vmatprep.subr.bf16.mxu1 %v3016_v29  ;;  %v2995_v29 = vld [vmem:[#allocation2 + $0x5a4] ss:$8 sps:$4 sm:$0xff]  }
  0xa3   :  { %1852 = vmatpush1.bf16.msra.mxu0 %v2834_v52  ;;  %v2927_v52 = vld [vmem:[#allocation2 + $0x4f0] ss:$8 sps:$4 sm:$0xff]  }
  0xa4   :  { %1864 = vmatprep.subr.bf16.mxu0 %v2839_v54  ;;  %1762 = vmatpush1.bf16.msra.mxu1 %v3014_v32  ;;  %v3342_v54 = vld [vmem:[%s3606_s0 + $0x28] sm:$0xff] }
  0xa5   :  { %1763 = vmatprep.subr.bf16.mxu1 %v3022_v33  ;;  %v2993_v32 = vld [vmem:[#allocation2 + $0x5a0] ss:$8 sps:$4 sm:$0xff]   ;;  %v3001_v33 = vld [vmem:[#allocation2 + $0x5b4] ss:$8 sps:$4 sm:$0xff]  }
  0xa6   :  { %1854 = vmatmul.mubr.bf16.vlgmr.msra.gmra.mrb[0].mxu0 %v2407_v58  ;;  %v2409_v58 = vcombine.low %v3314_v55, %v3319_v56  ;;  %v3359_v55 = vld [vmem:[#allocation4 + $0x14] ss:$8 sps:$4 sm:$0xff]   ;;  %v3361_v56 = vld [vmem:[#allocation4 + $0x10] ss:$8 sps:$4 sm:$0xff]  }
  0xa7   :  { %1865 = vmatpush1.bf16.msra.mxu0 %v2837_v60  ;;  %1896 = vmatprep.mubr.bf16.mxu0 %v2410_v61  ;;  %v2412_v60 = vcombine.high %v3342_v54, %v3347_v57  ;;  %v2941_v61 = vld [vmem:[#allocation2 + $0x514] ss:$8 sps:$4 sm:$0xff]  }
  0xa8   :  { %1866 = vmatprep.subr.bf16.mxu0 %v2845_v62  ;;  %1764 = vmatpush1.bf16.msra.mxu1 %v3020_v36  ;;  %v3353_v62 = vld [vmem:[#allocation4 + $0x4] ss:$8 sps:$4 sm:$0xff]   ;;  %v2999_v36 = vld [vmem:[#allocation2 + $0x5b0] ss:$8 sps:$4 sm:$0xff]  }
  0xa9   :  { %1765 = vmatprep.subr.bf16.mxu1 %v3028_v37  ;;  %v3007_v37 = vld [vmem:[#allocation2 + $0x5c4] ss:$8 sps:$4 sm:$0xff]  }
  0xab   :  { %1867 = vmatpush1.bf16.msra.mxu0 %v2843_v1  ;;  %v2947_v1 = vld [vmem:[#allocation2 + $0x524] ss:$8 sps:$4 sm:$0xff]  }
  0xac   :  { %1868 = vmatprep.subr.bf16.mxu0 %v2851_v2  ;;  %1766 = vmatpush1.bf16.msra.mxu1 %v3026_v40  ;;  %v2945_v2 = vld [vmem:[#allocation2 + $0x520] ss:$8 sps:$4 sm:$0xff]  }
  0xad   :  { %2238 = vmatprep.subr.bf16.mxu1 %v3353_v62  ;;  %v3005_v40 = vld [vmem:[#allocation2 + $0x5c0] ss:$8 sps:$4 sm:$0xff]  }
  0xaf   :  { %1869 = vmatpush1.bf16.msra.mxu0 %v2849_v4  ;;  %1768 = vmatmul.mubr.bf16.vlgmr.msra.gmra.mrb[0].mxu1 %v2403_v43  ;;  %v2951_v4 = vld [vmem:[#allocation2 + $0x530] ss:$8 sps:$4 sm:$0xff]   ;;  %v3427_v43 = vld [vmem:[#allocation4 + $0xc0] ss:$8 sps:$4 sm:$0xff]  }
  0xb0   :  { %1870 = vmatprep.subr.bf16.mxu0 %v2857_v7  ;;  %2239 = vmatpush1.bf16.msra.mxu1 %v3355_v63  ;;  %v3373_v7 = vld [vmem:[#allocation4 + $0x30] ss:$8 sps:$4 sm:$0xff]  }
  0xb1   :  { %2240 = vmatprep.subr.bf16.mxu1 %v3359_v55 }
  0xb3   :  { %1871 = vmatpush1.bf16.msra.mxu0 %v2855_v10  ;;  %v3377_v10 = vld [vmem:[#allocation4 + $0x44] ss:$8 sps:$4 sm:$0xff]  }
  0xb4   :  { %1872 = vmatprep.subr.bf16.mxu0 %v2863_v11  ;;  %2241 = vmatpush1.bf16.msra.mxu1 %v3361_v56  ;;  %v3379_v11 = vld [vmem:[#allocation4 + $0x40] ss:$8 sps:$4 sm:$0xff]  }
  0xb5   :  { %2242 = vmatprep.subr.bf16.mxu1 %v3365_v46 }
  0xb7   :  { %1873 = vmatpush1.bf16.msra.mxu0 %v2861_v14  ;;  %v3383_v14 = vld [vmem:[#allocation4 + $0x54] ss:$8 sps:$4 sm:$0xff]  }
  0xb8   :  { %1874 = vmatprep.subr.bf16.mxu0 %v2869_v15  ;;  %2243 = vmatpush1.bf16.msra.mxu1 %v3367_v3  ;;  %v3385_v15 = vld [vmem:[#allocation4 + $0x50] ss:$8 sps:$4 sm:$0xff]  }
  0xb9   :  { %2244 = vmatprep.subr.bf16.mxu1 %v3371_v6 }
  0xbb   :  { %1875 = vmatpush1.bf16.msra.mxu0 %v2867_v18  ;;  %v3389_v18 = vld [vmem:[#allocation4 + $0x64] ss:$8 sps:$4 sm:$0xff]  }
  0xbc   :  { %1876 = vmatprep.subr.bf16.mxu0 %v2875_v19  ;;  %2245 = vmatpush1.bf16.msra.mxu1 %v3373_v7  ;;  %v3391_v19 = vld [vmem:[#allocation4 + $0x60] ss:$8 sps:$4 sm:$0xff]  }
  0xbd   :  { %2246 = vmatprep.subr.bf16.mxu1 %v3377_v10 }
  0xbf   :  { %1877 = vmatpush1.bf16.msra.mxu0 %v2873_v22  ;;  %v3395_v22 = vld [vmem:[#allocation4 + $0x74] ss:$8 sps:$4 sm:$0xff]  }
  0xc0   :  { %1878 = vmatprep.subr.bf16.mxu0 %v2881_v23  ;;  %2247 = vmatpush1.bf16.msra.mxu1 %v3379_v11  ;;  %v3397_v23 = vld [vmem:[#allocation4 + $0x70] ss:$8 sps:$4 sm:$0xff]  }
  0xc1   :  { %2248 = vmatprep.subr.bf16.mxu1 %v3383_v14 }
  0xc3   :  { %1879 = vmatpush1.bf16.msra.mxu0 %v2879_v26  ;;  %v3401_v26 = vld [vmem:[#allocation4 + $0x84] ss:$8 sps:$4 sm:$0xff]  }
  0xc4   :  { %1880 = vmatprep.subr.bf16.mxu0 %v2887_v27  ;;  %2249 = vmatpush1.bf16.msra.mxu1 %v3385_v15  ;;  %v3403_v27 = vld [vmem:[#allocation4 + $0x80] ss:$8 sps:$4 sm:$0xff]  }
  0xc5   :  { %2250 = vmatprep.subr.bf16.mxu1 %v3389_v18 }
  0xc7   :  { %1881 = vmatpush1.bf16.msra.mxu0 %v2885_v30  ;;  %v3407_v30 = vld [vmem:[#allocation4 + $0x94] ss:$8 sps:$4 sm:$0xff]  }
  0xc8   :  { %1882 = vmatprep.subr.bf16.mxu0 %v2893_v31  ;;  %2251 = vmatpush1.bf16.msra.mxu1 %v3391_v19  ;;  %v3409_v31 = vld [vmem:[#allocation4 + $0x90] ss:$8 sps:$4 sm:$0xff]  }
  0xc9   :  { %2252 = vmatprep.subr.bf16.mxu1 %v3395_v22 }
  0xcb   :  { %1883 = vmatpush1.bf16.msra.mxu0 %v2891_v34  ;;  %v3413_v34 = vld [vmem:[#allocation4 + $0xa4] ss:$8 sps:$4 sm:$0xff]  }
  0xcc   :  { %1884 = vmatprep.subr.bf16.mxu0 %v2899_v35  ;;  %2253 = vmatpush1.bf16.msra.mxu1 %v3397_v23  ;;  %v3415_v35 = vld [vmem:[#allocation4 + $0xa0] ss:$8 sps:$4 sm:$0xff]  }
  0xcd   :  { %2254 = vmatprep.subr.bf16.mxu1 %v3401_v26 }
  0xcf   :  { %1885 = vmatpush1.bf16.msra.mxu0 %v2897_v38  ;;  %v3419_v38 = vld [vmem:[#allocation4 + $0xb4] ss:$8 sps:$4 sm:$0xff]  }
  0xd0   :  { %1886 = vmatprep.subr.bf16.mxu0 %v2905_v39  ;;  %2255 = vmatpush1.bf16.msra.mxu1 %v3403_v27  ;;  %v3421_v39 = vld [vmem:[#allocation4 + $0xb0] ss:$8 sps:$4 sm:$0xff]  }
  0xd1   :  { %2256 = vmatprep.subr.bf16.mxu1 %v3407_v30 }
  0xd3   :  { %1887 = vmatpush1.bf16.msra.mxu0 %v2903_v41  ;;  %v3013_v41 = vld [vmem:[#allocation2 + $0x5d4] ss:$8 sps:$4 sm:$0xff]  }
  0xd4   :  { %1888 = vmatprep.subr.bf16.mxu0 %v2911_v42  ;;  %2257 = vmatpush1.bf16.msra.mxu1 %v3409_v31  ;;  %v3425_v42 = vld [vmem:[#allocation4 + $0xc4] ss:$8 sps:$4 sm:$0xff]  }
  0xd5   :  { %2258 = vmatprep.subr.bf16.mxu1 %v3413_v34 }
  0xd7   :  { %1889 = vmatpush1.bf16.msra.mxu0 %v2909_v44  ;;  %v3011_v44 = vld [vmem:[#allocation2 + $0x5d0] ss:$8 sps:$4 sm:$0xff]  }
  0xd8   :  { %1890 = vmatprep.subr.bf16.mxu0 %v2917_v47  ;;  %2259 = vmatpush1.bf16.msra.mxu1 %v3415_v35  ;;  %v3019_v47 = vld [vmem:[#allocation2 + $0x5e4] ss:$8 sps:$4 sm:$0xff]  }
  0xd9   :  { %2260 = vmatprep.subr.bf16.mxu1 %v3419_v38 }
  0xdb   :  { %1891 = vmatpush1.bf16.msra.mxu0 %v2915_v48  ;;  %v3431_v48 = vld [vmem:[#allocation4 + $0xd4] ss:$8 sps:$4 sm:$0xff]  }
  0xdc   :  { %1892 = vmatprep.subr.bf16.mxu0 %v2923_v49  ;;  %2261 = vmatpush1.bf16.msra.mxu1 %v3421_v39  ;;  %v3433_v49 = vld [vmem:[#allocation4 + $0xd0] ss:$8 sps:$4 sm:$0xff]  }
  0xdd   :  { %2262 = vmatprep.subr.bf16.mxu1 %v3425_v42 }
  0xdf   :  { %1893 = vmatpush1.bf16.msra.mxu0 %v2921_v50  ;;  %v3017_v50 = vld [vmem:[#allocation2 + $0x5e0] ss:$8 sps:$4 sm:$0xff]  }
  0xe0   :  { %1894 = vmatprep.subr.bf16.mxu0 %v2929_v51  ;;  %2263 = vmatpush1.bf16.msra.mxu1 %v3427_v43  ;;  %v3025_v51 = vld [vmem:[#allocation2 + $0x5f4] ss:$8 sps:$4 sm:$0xff]  }
  0xe1   :  { %2264 = vmatprep.subr.bf16.mxu1 %v3431_v48 }
  0xe3   :  { %1895 = vmatpush1.bf16.msra.mxu0 %v2927_v52  ;;  %v3437_v52 = vld [vmem:[#allocation4 + $0xe4] ss:$8 sps:$4 sm:$0xff]  }
  0xe4   :  { %1907 = vmatprep.subr.bf16.mxu0 %v2935_v53  ;;  %2265 = vmatpush1.bf16.msra.mxu1 %v3433_v49  ;;  %v3439_v53 = vld [vmem:[#allocation4 + $0xe0] ss:$8 sps:$4 sm:$0xff]  }
  0xe5   :  { %2266 = vmatprep.subr.bf16.mxu1 %v3437_v52 }
  0xe6   :  { %1897 = vmatmul.mubr.bf16.vlgmr.msra.gmra.mrb[0].mxu0 %v2409_v58  ;;  %v3023_v58 = vld [vmem:[#allocation2 + $0x5f0] ss:$8 sps:$4 sm:$0xff]  }
  0xe7   :  { %1908 = vmatpush1.bf16.msra.mxu0 %v2933_v59  ;;  %1939 = vmatprep.mubr.bf16.mxu0 %v2412_v60  ;;  %v3031_v59 = vld [vmem:[#allocation2 + $0x604] ss:$8 sps:$4 sm:$0xff]   ;;  %v3445_v60 = vld [vmem:[%s3606_s0 + $0x30] sm:$0xff] }
  0xe8   :  { %1909 = vmatprep.subr.bf16.mxu0 %v2941_v61  ;;  %v3450_v61 = vld [vmem:[%s3606_s0 + $0x70] sm:$0xff]  ;;  %2267 = vmatpush1.bf16.msra.mxu1 %v3439_v53 }
  0xeb   :  { %1910 = vmatpush1.bf16.msra.mxu0 %v2939_v0  ;;  %v3453_v0 = vld [vmem:[#allocation4 + $0xf4] ss:$8 sps:$4 sm:$0xff]  }
  0xec   :  { %1911 = vmatprep.subr.bf16.mxu0 %v2947_v1  ;;  %v2411_v1 = vcombine.low %v3342_v54, %v3347_v57  ;;  %2268 = vmatprep.subr.bf16.mxu1 %v3453_v0  ;;  %v3034_v54 = vld [vmem:[#allocation2 + $0x614] ss:$8 sps:$4 sm:$0xff]  }
  0xef   :  { %1912 = vmatpush1.bf16.msra.mxu0 %v2945_v2  ;;  %v3457_v2 = vld [vmem:[#allocation4 + $0xf0] ss:$8 sps:$4 sm:$0xff]  }
  0xf0   :  { %1913 = vmatprep.subr.bf16.mxu0 %v2953_v45  ;;  %v3029_v45 = vld [vmem:[#allocation2 + $0x600] ss:$8 sps:$4 sm:$0xff]   ;;  %2269 = vmatpush1.bf16.msra.mxu1 %v3457_v2 }
  0xf1   :  { %2291 = vmatprep.subr.bf16.mxu1 %v3353_v62 }
  0xf3   :  { %1914 = vmatpush1.bf16.msra.mxu0 %v2951_v4  ;;  %v2414_v4 = vcombine.high %v3445_v60, %v3450_v61 }
  0xf4   :  { %1915 = vmatprep.subr.bf16.mxu0 %v2959_v5  ;;  %v3465_v5 = vld [vmem:[%s3607_s1 + $0x8] sm:$0xff] }
  0xf7   :  { %1916 = vmatpush1.bf16.msra.mxu0 %v2957_v8  ;;  %v3470_v8 = vld [vmem:[%s3607_s1 + $0x18] sm:$0xff] }
  0xf8   :  { %1917 = vmatprep.subr.bf16.mxu0 %v2965_v9  ;;  %v2045_v57 = vpack.c.bf16 %v3470_v8, %v3465_v5  ;;  %v3477_v9 = vld [vmem:[%s3607_s1] sm:$0xff] }
  0xfa   :  { %2270 = vmatprep.mubr.bf16.mxu1 %v2045_v57  ;;  %v3068_v57 = vld [vmem:[#allocation2 + $0x6d0] ss:$8 sps:$4 sm:$0xff]  }
  0xfb   :  { %1918 = vmatpush1.bf16.msra.mxu0 %v2963_v12  ;;  %v3482_v12 = vld [vmem:[%s3607_s1 + $0x10] sm:$0xff] }
  0xfc   :  { %1919 = vmatprep.subr.bf16.mxu0 %v2971_v13  ;;  %v2044_v13 = vpack.c.bf16 %v3482_v12, %v3477_v9 }
  0xfe   :  { %2271 = vmatmul.mubr.bf16.vlgmr.msra.gmra.mrb[4].mxu1 %v2044_v13  ;;  %v3073_v13 = vld [vmem:[#allocation2 + $0x6e4] ss:$8 sps:$4 sm:$0xff]  }
  0xff   :  { %1920 = vmatpush1.bf16.msra.mxu0 %v2969_v16  ;;  %v3032_v16 = vld [vmem:[#allocation2 + $0x610] ss:$8 sps:$4 sm:$0xff]   ;;  %2292 = vmatpush1.bf16.msra.mxu1 %v3355_v63 }
 0x100   :  { %1921 = vmatprep.subr.bf16.mxu0 %v2977_v17  ;;  %v3037_v17 = vld [vmem:[#allocation2 + $0x624] ss:$8 sps:$4 sm:$0xff]   ;;  %2293 = vmatprep.subr.bf16.mxu1 %v3359_v55 }
 0x103   :  { %1922 = vmatpush1.bf16.msra.mxu0 %v2975_v20  ;;  %v3035_v20 = vld [vmem:[#allocation2 + $0x620] ss:$8 sps:$4 sm:$0xff]   ;;  %2294 = vmatpush1.bf16.msra.mxu1 %v3361_v56 }
 0x104   :  { %1923 = vmatprep.subr.bf16.mxu0 %v2983_v21  ;;  %v3040_v21 = vld [vmem:[#allocation2 + $0x634] ss:$8 sps:$4 sm:$0xff]   ;;  %2295 = vmatprep.subr.bf16.mxu1 %v3365_v46 }
 0x107   :  { %1924 = vmatpush1.bf16.msra.mxu0 %v2981_v24  ;;  %v3038_v24 = vld [vmem:[#allocation2 + $0x630] ss:$8 sps:$4 sm:$0xff]   ;;  %2296 = vmatpush1.bf16.msra.mxu1 %v3367_v3 }
 0x108   :  { %1925 = vmatprep.subr.bf16.mxu0 %v2989_v25  ;;  %v3043_v25 = vld [vmem:[#allocation2 + $0x644] ss:$8 sps:$4 sm:$0xff]   ;;  %2297 = vmatprep.subr.bf16.mxu1 %v3371_v6 }
 0x10b   :  { %1926 = vmatpush1.bf16.msra.mxu0 %v2987_v28  ;;  %v3041_v28 = vld [vmem:[#allocation2 + $0x640] ss:$8 sps:$4 sm:$0xff]   ;;  %2298 = vmatpush1.bf16.msra.mxu1 %v3373_v7 }
 0x10c   :  { %1927 = vmatprep.subr.bf16.mxu0 %v2995_v29  ;;  %v3046_v29 = vld [vmem:[#allocation2 + $0x654] ss:$8 sps:$4 sm:$0xff]   ;;  %2299 = vmatprep.subr.bf16.mxu1 %v3377_v10 }
 0x10f   :  { %1928 = vmatpush1.bf16.msra.mxu0 %v2993_v32  ;;  %v3044_v32 = vld [vmem:[#allocation2 + $0x650] ss:$8 sps:$4 sm:$0xff]   ;;  %2300 = vmatpush1.bf16.msra.mxu1 %v3379_v11 }
 0x110   :  { %1929 = vmatprep.subr.bf16.mxu0 %v3001_v33  ;;  %v3049_v33 = vld [vmem:[#allocation2 + $0x664] ss:$8 sps:$4 sm:$0xff]   ;;  %2301 = vmatprep.subr.bf16.mxu1 %v3383_v14 }
 0x113   :  { %1930 = vmatpush1.bf16.msra.mxu0 %v2999_v36  ;;  %v3047_v36 = vld [vmem:[#allocation2 + $0x660] ss:$8 sps:$4 sm:$0xff]   ;;  %2302 = vmatpush1.bf16.msra.mxu1 %v3385_v15 }
 0x114   :  { %1931 = vmatprep.subr.bf16.mxu0 %v3007_v37  ;;  %v3052_v37 = vld [vmem:[#allocation2 + $0x674] ss:$8 sps:$4 sm:$0xff]   ;;  %2303 = vmatprep.subr.bf16.mxu1 %v3389_v18 }
 0x117   :  { %1932 = vmatpush1.bf16.msra.mxu0 %v3005_v40  ;;  %v3050_v40 = vld [vmem:[#allocation2 + $0x670] ss:$8 sps:$4 sm:$0xff]   ;;  %2304 = vmatpush1.bf16.msra.mxu1 %v3391_v19 }
 0x118   :  { %1933 = vmatprep.subr.bf16.mxu0 %v3013_v41  ;;  %v3055_v41 = vld [vmem:[#allocation2 + $0x684] ss:$8 sps:$4 sm:$0xff]   ;;  %2305 = vmatprep.subr.bf16.mxu1 %v3395_v22 }
 0x11b   :  { %1934 = vmatpush1.bf16.msra.mxu0 %v3011_v44  ;;  %v3053_v44 = vld [vmem:[#allocation2 + $0x680] ss:$8 sps:$4 sm:$0xff]   ;;  %2306 = vmatpush1.bf16.msra.mxu1 %v3397_v23 }
 0x11c   :  { %1935 = vmatprep.subr.bf16.mxu0 %v3019_v47  ;;  %v3058_v47 = vld [vmem:[#allocation2 + $0x694] ss:$8 sps:$4 sm:$0xff]   ;;  %2307 = vmatprep.subr.bf16.mxu1 %v3401_v26 }
 0x11f   :  { %1936 = vmatpush1.bf16.msra.mxu0 %v3017_v50  ;;  %v3056_v50 = vld [vmem:[#allocation2 + $0x690] ss:$8 sps:$4 sm:$0xff]   ;;  %2308 = vmatpush1.bf16.msra.mxu1 %v3403_v27 }
 0x120   :  { %1937 = vmatprep.subr.bf16.mxu0 %v3025_v51  ;;  %v3061_v51 = vld [vmem:[#allocation2 + $0x6a4] ss:$8 sps:$4 sm:$0xff]   ;;  %2309 = vmatprep.subr.bf16.mxu1 %v3407_v30 }
 0x123   :  { %1938 = vmatpush1.bf16.msra.mxu0 %v3023_v58  ;;  %v3059_v58 = vld [vmem:[#allocation2 + $0x6a0] ss:$8 sps:$4 sm:$0xff]   ;;  %2310 = vmatpush1.bf16.msra.mxu1 %v3409_v31 }
 0x124   :  { %1950 = vmatprep.subr.bf16.mxu0 %v3031_v59  ;;  %v3064_v59 = vld [vmem:[#allocation2 + $0x6b4] ss:$8 sps:$4 sm:$0xff]   ;;  %2311 = vmatprep.subr.bf16.mxu1 %v3413_v34 }
 0x126   :  { %1940 = vmatmul.mubr.bf16.vlgmr.msra.gmra.mrb[0].mxu0 %v2411_v1  ;;  %v3062_v1 = vld [vmem:[#allocation2 + $0x6b0] ss:$8 sps:$4 sm:$0xff]  }
 0x127   :  { %1951 = vmatpush1.bf16.msra.mxu0 %v3029_v45  ;;  %1982 = vmatprep.mubr.bf16.mxu0 %v2414_v4  ;;  %v3067_v45 = vld [vmem:[#allocation2 + $0x6c4] ss:$8 sps:$4 sm:$0xff]   ;;  %v3065_v4 = vld [vmem:[#allocation2 + $0x6c0] ss:$8 sps:$4 sm:$0xff]  }
 0x128   :  { %1952 = vmatprep.subr.bf16.mxu0 %v3034_v54  ;;  %2312 = vmatpush1.bf16.msra.mxu1 %v3415_v35  ;;  %v3070_v54 = vld [vmem:[#allocation2 + $0x6d4] ss:$8 sps:$4 sm:$0xff]  }
 0x129   :  { %2313 = vmatprep.subr.bf16.mxu1 %v3419_v38 }
 0x12b   :  { %1953 = vmatpush1.bf16.msra.mxu0 %v3032_v16  ;;  %v3071_v16 = vld [vmem:[#allocation2 + $0x6e0] ss:$8 sps:$4 sm:$0xff]  }
 0x12c   :  { %1954 = vmatprep.subr.bf16.mxu0 %v3037_v17  ;;  %2314 = vmatpush1.bf16.msra.mxu1 %v3421_v39  ;;  %v3076_v17 = vld [vmem:[#allocation2 + $0x6f4] ss:$8 sps:$4 sm:$0xff]  }
 0x12d   :  { %2315 = vmatprep.subr.bf16.mxu1 %v3425_v42 }
 0x12f   :  { %1955 = vmatpush1.bf16.msra.mxu0 %v3035_v20  ;;  %v3074_v20 = vld [vmem:[#allocation2 + $0x6f0] ss:$8 sps:$4 sm:$0xff]  }
 0x130   :  { %1956 = vmatprep.subr.bf16.mxu0 %v3040_v21  ;;  %2316 = vmatpush1.bf16.msra.mxu1 %v3427_v43  ;;  %v3079_v21 = vld [vmem:[#allocation2 + $0x704] ss:$8 sps:$4 sm:$0xff]  }
 0x131   :  { %2317 = vmatprep.subr.bf16.mxu1 %v3431_v48 }
 0x133   :  { %1957 = vmatpush1.bf16.msra.mxu0 %v3038_v24  ;;  %v3519_v24 = vld [vmem:[%s3606_s0 + $0x38] sm:$0xff] }
 0x134   :  { %1958 = vmatprep.subr.bf16.mxu0 %v3043_v25  ;;  %2318 = vmatpush1.bf16.msra.mxu1 %v3433_v49  ;;  %v3524_v25 = vld [vmem:[%s3606_s0 + $0x78] sm:$0xff] }
 0x135   :  { %2319 = vmatprep.subr.bf16.mxu1 %v3437_v52 }
 0x137   :  { %1959 = vmatpush1.bf16.msra.mxu0 %v3041_v28  ;;  %v2413_v28 = vcombine.low %v3445_v60, %v3450_v61  ;;  %v3089_v60 = vld [vmem:[#allocation2 + $0x720] ss:$8 sps:$4 sm:$0xff]   ;;  %v3097_v61 = vld [vmem:[#allocation2 + $0x734] ss:$8 sps:$4 sm:$0xff]  }
 0x138   :  { %1960 = vmatprep.subr.bf16.mxu0 %v3046_v29  ;;  %2320 = vmatpush1.bf16.msra.mxu1 %v3439_v53  ;;  %v3077_v29 = vld [vmem:[#allocation2 + $0x700] ss:$8 sps:$4 sm:$0xff]  }
 0x139   :  { %2321 = vmatprep.subr.bf16.mxu1 %v3453_v0 }
 0x13b   :  { %1961 = vmatpush1.bf16.msra.mxu0 %v3044_v32  ;;  %v2416_v32 = vcombine.high %v3519_v24, %v3524_v25 }
 0x13c   :  { %1962 = vmatprep.subr.bf16.mxu0 %v3049_v33  ;;  %v3085_v33 = vld [vmem:[#allocation2 + $0x714] ss:$8 sps:$4 sm:$0xff]   ;;  %2322 = vmatpush1.bf16.msra.mxu1 %v3457_v2 }
 0x13d   :  { %2344 = vmatprep.subr.bf16.mxu1 %v3353_v62  ;;  %v3121_v62 = vld [vmem:[#allocation2 + $0x774] ss:$8 sps:$4 sm:$0xff]  }
 0x13f   :  { %1963 = vmatpush1.bf16.msra.mxu0 %v3047_v36  ;;  %v3083_v36 = vld [vmem:[#allocation2 + $0x710] ss:$8 sps:$4 sm:$0xff]  }
 0x140   :  { %1964 = vmatprep.subr.bf16.mxu0 %v3052_v37  ;;  %v3091_v37 = vld [vmem:[#allocation2 + $0x724] ss:$8 sps:$4 sm:$0xff]  }
 0x143   :  { %1965 = vmatpush1.bf16.msra.mxu0 %v3050_v40  ;;  %v3095_v40 = vld [vmem:[#allocation2 + $0x730] ss:$8 sps:$4 sm:$0xff]  }
 0x144   :  { %1966 = vmatprep.subr.bf16.mxu0 %v3055_v41  ;;  %v3103_v41 = vld [vmem:[#allocation2 + $0x744] ss:$8 sps:$4 sm:$0xff]  }
 0x147   :  { %1967 = vmatpush1.bf16.msra.mxu0 %v3053_v44  ;;  %v3101_v44 = vld [vmem:[#allocation2 + $0x740] ss:$8 sps:$4 sm:$0xff]  }
 0x148   :  { %1968 = vmatprep.subr.bf16.mxu0 %v3058_v47  ;;  %v3109_v47 = vld [vmem:[#allocation2 + $0x754] ss:$8 sps:$4 sm:$0xff]  }
 0x14b   :  { %1969 = vmatpush1.bf16.msra.mxu0 %v3056_v50  ;;  %v3107_v50 = vld [vmem:[#allocation2 + $0x750] ss:$8 sps:$4 sm:$0xff]  }
 0x14c   :  { %1970 = vmatprep.subr.bf16.mxu0 %v3061_v51  ;;  %v3115_v51 = vld [vmem:[#allocation2 + $0x764] ss:$8 sps:$4 sm:$0xff]  }
 0x14f   :  { %1971 = vmatpush1.bf16.msra.mxu0 %v3059_v58  ;;  %v3113_v58 = vld [vmem:[#allocation2 + $0x760] ss:$8 sps:$4 sm:$0xff]  }
 0x150   :  { %1972 = vmatprep.subr.bf16.mxu0 %v3064_v59  ;;  %v3119_v59 = vld [vmem:[#allocation2 + $0x770] ss:$8 sps:$4 sm:$0xff]  }
 0x153   :  { %1973 = vmatpush1.bf16.msra.mxu0 %v3062_v1  ;;  %v3127_v1 = vld [vmem:[#allocation2 + $0x784] ss:$8 sps:$4 sm:$0xff]  }
 0x154   :  { %1974 = vmatprep.subr.bf16.mxu0 %v3067_v45  ;;  %v3125_v45 = vld [vmem:[#allocation2 + $0x780] ss:$8 sps:$4 sm:$0xff]  }
 0x157   :  { %1975 = vmatpush1.bf16.msra.mxu0 %v3065_v4  ;;  %v3133_v4 = vld [vmem:[#allocation2 + $0x794] ss:$8 sps:$4 sm:$0xff]  }
 0x158   :  { %1976 = vmatprep.subr.bf16.mxu0 %v3070_v54  ;;  %v3131_v54 = vld [vmem:[#allocation2 + $0x790] ss:$8 sps:$4 sm:$0xff]  }
 0x15b   :  { %1977 = vmatpush1.bf16.msra.mxu0 %v3068_v57  ;;  %v3139_v57 = vld [vmem:[#allocation2 + $0x7a4] ss:$8 sps:$4 sm:$0xff]  }
 0x15c   :  { %1978 = vmatprep.subr.bf16.mxu0 %v3073_v13  ;;  %v3137_v13 = vld [vmem:[#allocation2 + $0x7a0] ss:$8 sps:$4 sm:$0xff]  }
 0x15f   :  { %1979 = vmatpush1.bf16.msra.mxu0 %v3071_v16  ;;  %v3145_v16 = vld [vmem:[#allocation2 + $0x7b4] ss:$8 sps:$4 sm:$0xff]  }
 0x160   :  { %1980 = vmatprep.subr.bf16.mxu0 %v3076_v17  ;;  %v3143_v17 = vld [vmem:[#allocation2 + $0x7b0] ss:$8 sps:$4 sm:$0xff]  }
 0x163   :  { %1981 = vmatpush1.bf16.msra.mxu0 %v3074_v20  ;;  %v3151_v20 = vld [vmem:[#allocation2 + $0x7c4] ss:$8 sps:$4 sm:$0xff]  }
 0x164   :  { %1993 = vmatprep.subr.bf16.mxu0 %v3079_v21  ;;  %v3149_v21 = vld [vmem:[#allocation2 + $0x7c0] ss:$8 sps:$4 sm:$0xff]  }
 0x166   :  { %1983 = vmatmul.mubr.bf16.vlgmr.msra.gmra.mrb[0].mxu0 %v2413_v28  ;;  %v3157_v28 = vld [vmem:[#allocation2 + $0x7d4] ss:$8 sps:$4 sm:$0xff]  }
 0x167   :  { %1994 = vmatpush1.bf16.msra.mxu0 %v3077_v29  ;;  %2025 = vmatprep.mubr.bf16.mxu0 %v2416_v32  ;;  %v3155_v29 = vld [vmem:[#allocation2 + $0x7d0] ss:$8 sps:$4 sm:$0xff]   ;;  %v3163_v32 = vld [vmem:[#allocation2 + $0x7e4] ss:$8 sps:$4 sm:$0xff]  }
 0x168   :  { %1995 = vmatprep.subr.bf16.mxu0 %v3085_v33  ;;  %v3161_v33 = vld [vmem:[#allocation2 + $0x7e0] ss:$8 sps:$4 sm:$0xff]  }
 0x16b   :  { %1996 = vmatpush1.bf16.msra.mxu0 %v3083_v36  ;;  %v3169_v36 = vld [vmem:[#allocation2 + $0x7f4] ss:$8 sps:$4 sm:$0xff]  }
 0x16c   :  { %1997 = vmatprep.subr.bf16.mxu0 %v3091_v37  ;;  %v3167_v37 = vld [vmem:[#allocation2 + $0x7f0] ss:$8 sps:$4 sm:$0xff]  }
 0x16f   :  { %1998 = vmatpush1.bf16.msra.mxu0 %v3089_v60  ;;  %v2415_v60 = vcombine.low %v3519_v24, %v3524_v25 }
 0x170   :  { %1999 = vmatprep.subr.bf16.mxu0 %v3097_v61 }
 0x173   :  { %2000 = vmatpush1.bf16.msra.mxu0 %v3095_v40 }
 0x174   :  { %2001 = vmatprep.subr.bf16.mxu0 %v3103_v41 }
 0x177   :  { %2002 = vmatpush1.bf16.msra.mxu0 %v3101_v44 }
 0x178   :  { %2003 = vmatprep.subr.bf16.mxu0 %v3109_v47 }
 0x17b   :  { %2004 = vmatpush1.bf16.msra.mxu0 %v3107_v50 }
 0x17c   :  { %2005 = vmatprep.subr.bf16.mxu0 %v3115_v51 }
 0x17f   :  { %2006 = vmatpush1.bf16.msra.mxu0 %v3113_v58 }
 0x180   :  { %2007 = vmatprep.subr.bf16.mxu0 %v3121_v62  ;;  %v322_v62 = vlaneseq }
 0x182   :  { %v1769_v61 = vpop.f32.mrb[0].mxu1 }
 0x183   :  { %2008 = vmatpush1.bf16.msra.mxu0 %v3119_v59  ;;  %v1771_v40 = vpop.f32.mrb[1].mxu1  ;;  %v323_v59 = vshrl.u32 %v322_v62, 7 }
 0x184   :  { %2009 = vmatprep.subr.bf16.mxu0 %v3127_v1  ;;  %v1773_v41 = vpop.f32.mrb[2].mxu1 }
 0x185   :  { %v1775_v44 = vpop.f32.mrb[3].mxu1  ;;  %v324_v1 = vsub.s32 0, %v323_v59 }
 0x187   :  { %2010 = vmatpush1.bf16.msra.mxu0 %v3125_v45  ;;  %v320_v45 = vld [vmem:[%s3610_s4] sm:$0x3] }
 0x188   :  { %2011 = vmatprep.subr.bf16.mxu0 %v3133_v4  ;;  %v328_v4 = vsub.s32 1, %v323_v59 }
 0x18a   :  { %v329_v24 = vrot.slane %v320_v45, %v328_v4 }
 0x18b   :  { %2012 = vmatpush1.bf16.msra.mxu0 %v3131_v54  ;;  %v325_v54 = vrot.slane %v320_v45, %v324_v1 }
 0x18c   :  { %2013 = vmatprep.subr.bf16.mxu0 %v3139_v57  ;;  %v2707_v57 = vadd.f32 %v1771_v40, %v329_v24 }
 0x18d   :  { %v2705_v25 = vadd.f32 %v1769_v61, %v325_v54 }
 0x18f   :  { %2014 = vmatpush1.bf16.msra.mxu0 %v3137_v13 }
 0x190   :  { %2015 = vmatprep.subr.bf16.mxu0 %v3145_v16  ;;  %v2709_v16 = vadd.f32 %v1773_v41, %v325_v54 }
 0x193   :  { %2016 = vmatpush1.bf16.msra.mxu0 %v3143_v17 }
 0x194   :  { %2017 = vmatprep.subr.bf16.mxu0 %v3151_v20 }
 0x197   :  { %2018 = vmatpush1.bf16.msra.mxu0 %v3149_v21  ;;  %v2711_v21 = vadd.f32 %v1775_v44, %v329_v24 }
 0x198   :  { %2019 = vmatprep.subr.bf16.mxu0 %v3157_v28 }
 0x19b   :  { %2020 = vmatpush1.bf16.msra.mxu0 %v3155_v29 }
 0x19c   :  { %2021 = vmatprep.subr.bf16.mxu0 %v3163_v32 }
 0x19f   :  { %2022 = vmatpush1.bf16.msra.mxu0 %v3161_v33 }
 0x1a0   :  { %2023 = vmatprep.subr.bf16.mxu0 %v3169_v36 }
 0x1a3   :  { %2024 = vmatpush1.bf16.msra.mxu0 %v3167_v37 }
 0x1a6   :  { %2026 = vmatmul.mubr.bf16.vlgmr.msra.gmra.mrb[0].mxu0 %v2415_v60 }
 0x1d1   :  { %v2272_v47 = vpop.f32.mrb[4].mxu1 }
 0x1d2   :  { %v2274_v50 = vpop.f32.mrb[5].mxu1 }
 0x1d3   :  { %v2276_v51 = vpop.f32.mrb[6].mxu1 }
 0x1d4   :  { %v2278_v58 = vpop.f32.mrb[7].mxu1 }
 0x279   :  { %v2027_v13 = vpop.f32.mrb[0].mxu0 }
 0x27a   :  { %v3539_v17 = vadd.f32 %v2705_v25, %v2027_v13  ;;  %v2029_v20 = vpop.f32.mrb[1].mxu0 }
 0x27b   :  { %v3541_v28 = vadd.f32 %v2707_v57, %v2029_v20  ;;  %v2031_v29 = vpop.f32.mrb[2].mxu0 }
 0x27c   :  { %v2040_v32 = vadd.f32 %v3539_v17, %v3477_v9  ;;  %v3545_v33 = vadd.f32 %v2709_v16, %v2031_v29  ;;  %v2033_v36 = vpop.f32.mrb[3].mxu0 }
 0x27d   :  { %v2041_v37 = vadd.f32 %v3541_v28, %v3465_v5  ;;  %v3549_v60 = vadd.f32 %v2711_v21, %v2033_v36 }
 0x27e   :  { %v2042_v61 = vadd.f32 %v3545_v33, %v3482_v12  ;;  %v2281_v41 = vadd.f32 %v2272_v47, %v2040_v32 }
 0x27f   :  { %v2043_v40 = vadd.f32 %v3549_v60, %v3470_v8  ;;  %v2282_v62 = vadd.f32 %v2274_v50, %v2041_v37 }
 0x280   :  { %v2283_v44 = vadd.f32 %v2276_v51, %v2042_v61 }
 0x281   :  { %v2284_v59 = vadd.f32 %v2278_v58, %v2043_v40 }
 0x282   :  { %v2289_v1 = vpack.c.bf16 %v2283_v44, %v2281_v41 }
 0x283   :  { %v2290_v9 = vpack.c.bf16 %v2284_v59, %v2282_v62 }
 0x285   :  { %2323 = vmatprep.mubr.bf16.mxu1 %v2290_v9 }
 0x286   :  { %2324 = vmatmul.mubr.bf16.vlgmr.msra.gmra.mrb[8].mxu1 %v2289_v1 }
 0x287   :  { %2345 = vmatpush1.bf16.msra.mxu1 %v3355_v63  ;;  %v2285_v63 = vadd.f32 %v3539_v17, %v2281_v41 }
 0x288   :  { %2346 = vmatprep.subr.bf16.mxu1 %v3359_v55 }
 0x28b   :  { %2347 = vmatpush1.bf16.msra.mxu1 %v3361_v56  ;;  %v2286_v56 = vadd.f32 %v3541_v28, %v2282_v62 }
 0x28c   :  { %2348 = vmatprep.subr.bf16.mxu1 %v3365_v46 }
 0x28f   :  { %2349 = vmatpush1.bf16.msra.mxu1 %v3367_v3 }
 0x290   :  { %2350 = vmatprep.subr.bf16.mxu1 %v3371_v6  ;;  %v2287_v6 = vadd.f32 %v3545_v33, %v2283_v44 }
 0x293   :  { %2351 = vmatpush1.bf16.msra.mxu1 %v3373_v7 }
 0x294   :  { %2352 = vmatprep.subr.bf16.mxu1 %v3377_v10 }
 0x297   :  { %2353 = vmatpush1.bf16.msra.mxu1 %v3379_v11  ;;  %v2288_v11 = vadd.f32 %v3549_v60, %v2284_v59 }
 0x298   :  { %2354 = vmatprep.subr.bf16.mxu1 %v3383_v14 }
 0x29b   :  { %2355 = vmatpush1.bf16.msra.mxu1 %v3385_v15 }
 0x29c   :  { %2356 = vmatprep.subr.bf16.mxu1 %v3389_v18 }
 0x29f   :  { %2357 = vmatpush1.bf16.msra.mxu1 %v3391_v19 }
 0x2a0   :  { %2358 = vmatprep.subr.bf16.mxu1 %v3395_v22 }
 0x2a3   :  { %2359 = vmatpush1.bf16.msra.mxu1 %v3397_v23 }
 0x2a4   :  { %2360 = vmatprep.subr.bf16.mxu1 %v3401_v26 }
 0x2a7   :  { %2361 = vmatpush1.bf16.msra.mxu1 %v3403_v27 }
 0x2a8   :  { %2362 = vmatprep.subr.bf16.mxu1 %v3407_v30 }
 0x2ab   :  { %2363 = vmatpush1.bf16.msra.mxu1 %v3409_v31 }
 0x2ac   :  { %2364 = vmatprep.subr.bf16.mxu1 %v3413_v34 }
 0x2af   :  { %2365 = vmatpush1.bf16.msra.mxu1 %v3415_v35 }
 0x2b0   :  { %2366 = vmatprep.subr.bf16.mxu1 %v3419_v38 }
 0x2b3   :  { %2367 = vmatpush1.bf16.msra.mxu1 %v3421_v39 }
 0x2b4   :  { %2368 = vmatprep.subr.bf16.mxu1 %v3425_v42 }
 0x2b7   :  { %2369 = vmatpush1.bf16.msra.mxu1 %v3427_v43 }
 0x2b8   :  { %2370 = vmatprep.subr.bf16.mxu1 %v3431_v48 }
 0x2bb   :  { %2371 = vmatpush1.bf16.msra.mxu1 %v3433_v49 }
 0x2bc   :  { %2372 = vmatprep.subr.bf16.mxu1 %v3437_v52 }
 0x2bf   :  { %2373 = vmatpush1.bf16.msra.mxu1 %v3439_v53 }
 0x2c0   :  { %2374 = vmatprep.subr.bf16.mxu1 %v3453_v0 }
 0x2c3   :  { %2375 = vmatpush1.bf16.msra.mxu1 %v3457_v2 }
 0x359   :  { %v2325_v55 = vpop.f32.mrb[8].mxu1 }
 0x35a   :  { %v2334_v46 = vadd.f32 %v2325_v55, %v2285_v63  ;;  %v2327_v3 = vpop.f32.mrb[9].mxu1 }
 0x35b   :  { %v2335_v7 = vadd.f32 %v2327_v3, %v2286_v56  ;;  %v2329_v10 = vpop.f32.mrb[10].mxu1 }
 0x35c   :  { %v2336_v14 = vadd.f32 %v2329_v10, %v2287_v6  ;;  %v2331_v15 = vpop.f32.mrb[11].mxu1  ;;  %v2338_v23 = vadd.f32 %v3539_v17, %v2334_v46 }
 0x35d   :  { %v2337_v18 = vadd.f32 %v2331_v15, %v2288_v11  ;;  %v2339_v27 = vadd.f32 %v3541_v28, %v2335_v7 }
 0x35e   :  { %v2342_v19 = vpack.c.bf16 %v2336_v14, %v2334_v46  ;;  %v2340_v34 = vadd.f32 %v3545_v33, %v2336_v14 }
 0x35f   :  { %v2343_v22 = vpack.c.bf16 %v2337_v18, %v2335_v7  ;;  %v2341_v39 = vadd.f32 %v3549_v60, %v2337_v18 }
 0x361   :  { %2376 = vmatprep.mubr.bf16.mxu1 %v2343_v22 }
 0x362   :  { %2377 = vmatmul.mubr.bf16.vlgmr.msra.gmra.mrb[12].mxu1 %v2342_v19 }
 0x435   :  { %v2378_v26 = vpop.f32.mrb[12].mxu1 }
 0x436   :  { %v2387_v30 = vadd.f32 %v2378_v26, %v2338_v23  ;;  %v2380_v31 = vpop.f32.mrb[13].mxu1 }
 0x437   :  { %v2388_v35 = vadd.f32 %v2380_v31, %v2339_v27  ;;  %v2382_v38 = vpop.f32.mrb[14].mxu1 }
 0x438   :  { %2391 = vst [vmem:[%s3611_s5] sm:$0xff] %v2387_v30  ;;  %v2389_v42 = vadd.f32 %v2382_v38, %v2340_v34  ;;  %v2384_v43 = vpop.f32.mrb[15].mxu1 }
 0x439   :  { %2392 = vst [vmem:[%s3611_s5 + $0x8] sm:$0xff] %v2388_v35  ;;  %v2390_v48 = vadd.f32 %v2384_v43, %v2341_v39 }
 0x43a   :  { %2393 = vst [vmem:[%s3611_s5 + $0x10] sm:$0xff] %v2389_v42 }
 0x43b   :  { %2394 = vst [vmem:[%s3611_s5 + $0x18] sm:$0xff] %v2390_v48 }
 0x43c   :  { %2399 = vsyncpa [#allocation3], 1 }
 0x43d   :  { %2400 = vsyncpa [#allocation5], 1 }

</bundles_post_ra>
